<compile_context>
chip_gen: v7x
topology: tpu7x:2x2x1
jax: 0.10.0
libtpu: 0.0.40
codegen_flags: <defaults>
</compile_context>

<pallas_src>
import functools
import math

import jax
import jax.numpy as jnp
from jax.experimental import pallas as pl
from jax.experimental.pallas import tpu as pltpu

MASK_RATIO = 0.05
NOISE_MEAN = 0.0
NOISE_STD = 1e-4

_SALT_MASK = 0x2545F491   # fits in int32
_SALT_NOISE = 0x68E31DA4  # fits in int32


# ----------------------------------------------------------------------------
# Counter-based PRNG built from plain int32 VPU ops (portable: Mosaic + interpret)
# ----------------------------------------------------------------------------
def _lshr(v, k):
    """Logical right shift for int32 (arithmetic shift + mask of sign bits)."""
    return jnp.bitwise_and(jnp.right_shift(v, k), jnp.int32((1 << (32 - k)) - 1))


def _mix32(h):
    """murmur3 fmix32 finalizer; int32 multiplies wrap, matching uint32 mod 2^32."""
    h = jnp.bitwise_xor(h, _lshr(h, 16))
    h = h * jnp.int32(-2048144789)      # 0x85ebca6b
    h = jnp.bitwise_xor(h, _lshr(h, 13))
    h = h * jnp.int32(-1028477387)      # 0xc2b2ae35
    h = jnp.bitwise_xor(h, _lshr(h, 16))
    return h


def _uniform01(idx, seed, salt):
    """Uniform [0, 1) float32 keyed by (idx, seed, salt); same idx -> same value."""
    h = idx * jnp.int32(-1640531535)    # 0x9e3779b1 (golden-ratio spread)
    h = jnp.bitwise_xor(h, seed + jnp.int32(salt))
    h = _mix32(h)
    bits = jnp.bitwise_and(h, jnp.int32(0x007FFFFF))
    return bits.astype(jnp.float32) * (1.0 / float(1 << 23))


def _ndtri(p):
    """Acklam's rational approximation of the inverse normal CDF (float32).

    Only add/mul/div/sqrt/log/where -> no trig, lowers on TPU and interpreter.
    """
    a1, a2, a3 = -3.969683028665376e+01, 2.209460984245205e+02, -2.759285104469687e+02
    a4, a5, a6 = 1.383577518672690e+02, -3.066479806614716e+01, 2.506628277459239e+00
    b1, b2, b3 = -5.447609879822406e+01, 1.615858368580409e+02, -1.556989798598866e+02
    b4, b5 = 6.680131188771972e+01, -1.328068155288572e+01
    c1, c2, c3 = -7.784894002430293e-03, -3.223964580411365e-01, -2.400758277161838e+00
    c4, c5, c6 = -2.549732539343734e+00, 4.374664141464968e+00, 2.938163982698783e+00
    d1, d2, d3, d4 = 7.784695709041462e-03, 3.224671290700398e-01, 2.445134137142996e+00, 3.754408661907416e+00
    p_low = 0.02425

    # central region
    q = p - 0.5
    r = q * q
    num = (((((a1 * r + a2) * r + a3) * r + a4) * r + a5) * r + a6) * q
    den = ((((b1 * r + b2) * r + b3) * r + b4) * r + b5) * r + 1.0
    x_central = num / den

    # tails: evaluate once on min(p, 1-p), mirror the sign (halves log/sqrt work)
    pmin = jnp.minimum(p, 1.0 - p)
    qt = jnp.sqrt(-2.0 * jnp.log(jnp.maximum(pmin, 1e-12)))
    numt = ((((c1 * qt + c2) * qt + c3) * qt + c4) * qt + c5) * qt + c6
    dent = (((d1 * qt + d2) * qt + d3) * qt + d4) * qt + 1.0
    x_tail = numt / dent                       # lower-tail (negative) value
    x_tail = jnp.where(p > 0.5, -x_tail, x_tail)

    return jnp.where(pmin < p_low, x_tail, x_central)


# ----------------------------------------------------------------------------
# Kernel
# ----------------------------------------------------------------------------
def _feature_mask_kernel(seed_ref, x_ref, o_ref, *, mask_ratio, noise_mean,
                         noise_std, L, C, k, Lg):
    # Block view of the folded array (B, Lg, W) with W = k*C (lane-dense when possible).
    tb, tl, W = x_ref.shape
    bi = pl.program_id(0)
    li = pl.program_id(1)
    seed = seed_ref[0]

    shape = (tb, tl, W)
    b = bi * tb + jax.lax.broadcasted_iota(jnp.int32, shape, 0)   # batch index
    g = li * tl + jax.lax.broadcasted_iota(jnp.int32, shape, 1)   # folded token-group index
    j = jax.lax.broadcasted_iota(jnp.int32, shape, 2)             # lane index within group

    # sub-token within the folded group: s = j // C (exact via float trick, j < W is small)
    s = ((j.astype(jnp.float32) + 0.5) * (1.0 / float(C))).astype(jnp.int32)

    token = b * L + g * k + s          # one id per (batch, token); constant across C channels
    elem = (b * Lg + g) * W + j        # unique id per element (== b*L*C + l*C + c)

    # Token-level Bernoulli mask (broadcasts over channels with no relayout).
    u_tok = _uniform01(token, seed, _SALT_MASK)
    masked = u_tok < mask_ratio

    # Element-level clamped Gaussian noise (inverse CDF of an independent uniform).
    u_elt = _uniform01(elem, seed, _SALT_NOISE)
    z = _ndtri(u_elt)
    noise = jnp.clip(z * noise_std + noise_mean,
                     noise_mean - 2.0 * noise_std,
                     noise_mean + 2.0 * noise_std)

    x = x_ref[...]
    # Cast only the (masked) noise term; add in x's native dtype.
    o_ref[...] = x + jnp.where(masked, noise, 0.0).astype(x.dtype)


# ----------------------------------------------------------------------------
# Wrapper: folding + tiling heuristics + pallas_call
# ----------------------------------------------------------------------------
def _fold_factor(L, C):
    """Smallest k with (k*C) % 128 == 0 and L % k == 0; falls back to 1."""
    if C % 128 == 0:
        return 1
    k = 128 // math.gcd(C, 128)
    return k if L % k == 0 else 1


def _choose_tiles(B, Lg, W, itemsize, budget_bytes):
    """Pick (tb, tl) so the block is big (for HBM roofline) but VMEM-safe."""
    row_bytes = W * itemsize
    if B * Lg * row_bytes <= budget_bytes:
        return B, Lg
    if Lg * row_bytes <= budget_bytes:
        tb = max(1, budget_bytes // (Lg * row_bytes))
        while tb > 1 and B % tb:
            tb -= 1
        return tb, Lg
    # Tile the token-group axis: tl must be a multiple of 8 dividing Lg (or Lg itself).
    max_rows = max(8, budget_bytes // row_bytes)
    tl = 0
    d = 8
    while d <= min(Lg, max_rows):
        if Lg % d == 0:
            tl = d
        d += 8
    if tl == 0:
        tl = Lg
    return 1, tl


def feature_level_mask(x, seed, *, mask_ratio=MASK_RATIO, noise_mean=NOISE_MEAN,
                       noise_std=NOISE_STD, block_budget_bytes=512 * 1024):
    """x: (B, L, C) float array. Adds clamped Gaussian noise on ~mask_ratio of tokens."""
    B, L, C = x.shape
    k = _fold_factor(L, C)
    Lg, W = L // k, k * C
    xf = x.reshape(B, Lg, W)                      # lane-dense last dim when possible

    tb, tl = _choose_tiles(B, Lg, W, x.dtype.itemsize, block_budget_bytes)
    grid = (B // tb, Lg // tl)

    kernel = functools.partial(
        _feature_mask_kernel,
        mask_ratio=float(mask_ratio), noise_mean=float(noise_mean),
        noise_std=float(noise_std), L=L, C=C, k=k, Lg=Lg)
    seed_arr = jnp.asarray([seed], dtype=jnp.int32)

    out = pl.pallas_call(
        kernel,
        out_shape=jax.ShapeDtypeStruct((B, Lg, W), x.dtype),
        grid_spec=pltpu.PrefetchScalarGridSpec(
            num_scalar_prefetch=1,                # seed lands in SMEM
            grid=grid,
            in_specs=[pl.BlockSpec((tb, tl, W), lambda i, j, seed_ref: (i, j, 0))],
            out_specs=pl.BlockSpec((tb, tl, W), lambda i, j, seed_ref: (i, j, 0)),
        ),
        compiler_params=pltpu.CompilerParams(
            dimension_semantics=("parallel", "parallel")),
        # If the caller never reuses x, input_output_aliases={1: 0} would let the
        # output reuse x's HBM buffer (the PyTorch module clones, so we don't).
    )(seed_arr, xf)
    return out.reshape(B, L, C)


if __name__ == "__main__":
    key = jax.random.PRNGKey(0)
    B, L, C = 2, 128, 32  # small (B, L, C) token-feature layout the module consumes
    x = jax.random.normal(key, (B, L, C), dtype=jnp.float32)

    y = jax.block_until_ready(feature_level_mask(x, seed=0))

    assert y.shape == x.shape and y.dtype == x.dtype
    delta = y - x
    max_delta = float(jnp.max(jnp.abs(delta)))
    # Any change must be additive noise clamped to +-2*std.
    assert max_delta <= 2.0 * NOISE_STD + 1e-7, max_delta
    # Roughly mask_ratio of tokens should be perturbed (whole token or nothing).
    token_changed = jnp.any(jnp.abs(delta) > 0, axis=-1)
    frac = float(jnp.mean(token_changed.astype(jnp.float32)))
    assert 0.0 < frac < 0.3, frac
    print("KERNEL_OK")
</pallas_src>

<mosaic_0001>
module attributes {stable_mosaic.version = 11 : i64} {
  func.func @_feature_mask_kernel(%arg0: i32, %arg1: i32, %arg2: memref<1xi32, #tpu.memory_space<smem>>, %arg3: memref<2x32x128xf32, #tpu.memory_space<vmem>>, %arg4: memref<2x32x128xf32, #tpu.memory_space<vmem>>) attributes {dimension_semantics = [#tpu.dimension_semantics<parallel>, #tpu.dimension_semantics<parallel>], iteration_bounds = array<i64: 1, 1>, scalar_prefetch = 1 : i64, scratch_operands = 0 : i64, tpu.core_type = #tpu.core_type<tc>, window_params = [{transform_indices = @transform_0, window_bounds = array<i64: 2, 32, 128>}, {transform_indices = @transform_1, window_bounds = array<i64: 2, 32, 128>}]} {
    %c0 = arith.constant 0 : index
    %0 = memref.load %arg2[%c0] : memref<1xi32, #tpu.memory_space<smem>>
    %c2_i32 = arith.constant 2 : i32
    %1 = arith.muli %arg0, %c2_i32 : i32
    %2 = tpu.iota {dimensions = array<i32: 0>} : vector<2x32x128xi32>
    %3 = vector.broadcast %1 : i32 to vector<2x32x128xi32>
    %4 = arith.addi %3, %2 : vector<2x32x128xi32>
    %c32_i32 = arith.constant 32 : i32
    %5 = arith.muli %arg1, %c32_i32 : i32
    %6 = tpu.iota {dimensions = array<i32: 1>} : vector<2x32x128xi32>
    %7 = vector.broadcast %5 : i32 to vector<2x32x128xi32>
    %8 = arith.addi %7, %6 : vector<2x32x128xi32>
    %9 = tpu.iota {dimensions = array<i32: 2>} : vector<2x32x128xi32>
    %10 = arith.sitofp %9 : vector<2x32x128xi32> to vector<2x32x128xf32>
    %cst = arith.constant 5.000000e-01 : f32
    %11 = vector.broadcast %cst : f32 to vector<2x32x128xf32>
    %12 = arith.addf %10, %11 : vector<2x32x128xf32>
    %cst_0 = arith.constant 3.125000e-02 : f32
    %13 = vector.broadcast %cst_0 : f32 to vector<2x32x128xf32>
    %14 = arith.mulf %12, %13 : vector<2x32x128xf32>
    %15 = arith.fptosi %14 : vector<2x32x128xf32> to vector<2x32x128xi32>
    %c128_i32 = arith.constant 128 : i32
    %16 = vector.broadcast %c128_i32 : i32 to vector<2x32x128xi32>
    %17 = arith.muli %4, %16 : vector<2x32x128xi32>
    %c4_i32 = arith.constant 4 : i32
    %18 = vector.broadcast %c4_i32 : i32 to vector<2x32x128xi32>
    %19 = arith.muli %8, %18 : vector<2x32x128xi32>
    %20 = arith.addi %17, %19 : vector<2x32x128xi32>
    %21 = arith.addi %20, %15 : vector<2x32x128xi32>
    %c32_i32_1 = arith.constant 32 : i32
    %22 = vector.broadcast %c32_i32_1 : i32 to vector<2x32x128xi32>
    %23 = arith.muli %4, %22 : vector<2x32x128xi32>
    %24 = arith.addi %23, %8 : vector<2x32x128xi32>
    %c128_i32_2 = arith.constant 128 : i32
    %25 = vector.broadcast %c128_i32_2 : i32 to vector<2x32x128xi32>
    %26 = arith.muli %24, %25 : vector<2x32x128xi32>
    %27 = arith.addi %26, %9 : vector<2x32x128xi32>
    %c-1640531535_i32 = arith.constant -1640531535 : i32
    %28 = vector.broadcast %c-1640531535_i32 : i32 to vector<2x32x128xi32>
    %29 = arith.muli %21, %28 : vector<2x32x128xi32>
    %c625341585_i32 = arith.constant 625341585 : i32
    %30 = arith.addi %0, %c625341585_i32 : i32
    %31 = vector.broadcast %30 : i32 to vector<2x32x128xi32>
    %32 = arith.xori %29, %31 : vector<2x32x128xi32>
    %c16_i32 = arith.constant 16 : i32
    %33 = vector.broadcast %c16_i32 : i32 to vector<2x32x128xi32>
    %34 = arith.shrsi %32, %33 : vector<2x32x128xi32>
    %c65535_i32 = arith.constant 65535 : i32
    %35 = vector.broadcast %c65535_i32 : i32 to vector<2x32x128xi32>
    %36 = arith.andi %34, %35 : vector<2x32x128xi32>
    %37 = arith.xori %32, %36 : vector<2x32x128xi32>
    %c-2048144789_i32 = arith.constant -2048144789 : i32
    %38 = vector.broadcast %c-2048144789_i32 : i32 to vector<2x32x128xi32>
    %39 = arith.muli %37, %38 : vector<2x32x128xi32>
    %c13_i32 = arith.constant 13 : i32
    %40 = vector.broadcast %c13_i32 : i32 to vector<2x32x128xi32>
    %41 = arith.shrsi %39, %40 : vector<2x32x128xi32>
    %c524287_i32 = arith.constant 524287 : i32
    %42 = vector.broadcast %c524287_i32 : i32 to vector<2x32x128xi32>
    %43 = arith.andi %41, %42 : vector<2x32x128xi32>
    %44 = arith.xori %39, %43 : vector<2x32x128xi32>
    %c-1028477387_i32 = arith.constant -1028477387 : i32
    %45 = vector.broadcast %c-1028477387_i32 : i32 to vector<2x32x128xi32>
    %46 = arith.muli %44, %45 : vector<2x32x128xi32>
    %c16_i32_3 = arith.constant 16 : i32
    %47 = vector.broadcast %c16_i32_3 : i32 to vector<2x32x128xi32>
    %48 = arith.shrsi %46, %47 : vector<2x32x128xi32>
    %c65535_i32_4 = arith.constant 65535 : i32
    %49 = vector.broadcast %c65535_i32_4 : i32 to vector<2x32x128xi32>
    %50 = arith.andi %48, %49 : vector<2x32x128xi32>
    %51 = arith.xori %46, %50 : vector<2x32x128xi32>
    %c8388607_i32 = arith.constant 8388607 : i32
    %52 = vector.broadcast %c8388607_i32 : i32 to vector<2x32x128xi32>
    %53 = arith.andi %51, %52 : vector<2x32x128xi32>
    %54 = arith.sitofp %53 : vector<2x32x128xi32> to vector<2x32x128xf32>
    %cst_5 = arith.constant 1.1920929E-7 : f32
    %55 = vector.broadcast %cst_5 : f32 to vector<2x32x128xf32>
    %56 = arith.mulf %54, %55 : vector<2x32x128xf32>
    %cst_6 = arith.constant 5.000000e-02 : f32
    %57 = vector.broadcast %cst_6 : f32 to vector<2x32x128xf32>
    %58 = arith.cmpf olt, %56, %57 : vector<2x32x128xf32>
    %c-1640531535_i32_7 = arith.constant -1640531535 : i32
    %59 = vector.broadcast %c-1640531535_i32_7 : i32 to vector<2x32x128xi32>
    %60 = arith.muli %27, %59 : vector<2x32x128xi32>
    %c1759714724_i32 = arith.constant 1759714724 : i32
    %61 = arith.addi %0, %c1759714724_i32 : i32
    %62 = vector.broadcast %61 : i32 to vector<2x32x128xi32>
    %63 = arith.xori %60, %62 : vector<2x32x128xi32>
    %c16_i32_8 = arith.constant 16 : i32
    %64 = vector.broadcast %c16_i32_8 : i32 to vector<2x32x128xi32>
    %65 = arith.shrsi %63, %64 : vector<2x32x128xi32>
    %c65535_i32_9 = arith.constant 65535 : i32
    %66 = vector.broadcast %c65535_i32_9 : i32 to vector<2x32x128xi32>
    %67 = arith.andi %65, %66 : vector<2x32x128xi32>
    %68 = arith.xori %63, %67 : vector<2x32x128xi32>
    %c-2048144789_i32_10 = arith.constant -2048144789 : i32
    %69 = vector.broadcast %c-2048144789_i32_10 : i32 to vector<2x32x128xi32>
    %70 = arith.muli %68, %69 : vector<2x32x128xi32>
    %c13_i32_11 = arith.constant 13 : i32
    %71 = vector.broadcast %c13_i32_11 : i32 to vector<2x32x128xi32>
    %72 = arith.shrsi %70, %71 : vector<2x32x128xi32>
    %c524287_i32_12 = arith.constant 524287 : i32
    %73 = vector.broadcast %c524287_i32_12 : i32 to vector<2x32x128xi32>
    %74 = arith.andi %72, %73 : vector<2x32x128xi32>
    %75 = arith.xori %70, %74 : vector<2x32x128xi32>
    %c-1028477387_i32_13 = arith.constant -1028477387 : i32
    %76 = vector.broadcast %c-1028477387_i32_13 : i32 to vector<2x32x128xi32>
    %77 = arith.muli %75, %76 : vector<2x32x128xi32>
    %c16_i32_14 = arith.constant 16 : i32
    %78 = vector.broadcast %c16_i32_14 : i32 to vector<2x32x128xi32>
    %79 = arith.shrsi %77, %78 : vector<2x32x128xi32>
    %c65535_i32_15 = arith.constant 65535 : i32
    %80 = vector.broadcast %c65535_i32_15 : i32 to vector<2x32x128xi32>
    %81 = arith.andi %79, %80 : vector<2x32x128xi32>
    %82 = arith.xori %77, %81 : vector<2x32x128xi32>
    %c8388607_i32_16 = arith.constant 8388607 : i32
    %83 = vector.broadcast %c8388607_i32_16 : i32 to vector<2x32x128xi32>
    %84 = arith.andi %82, %83 : vector<2x32x128xi32>
    %85 = arith.sitofp %84 : vector<2x32x128xi32> to vector<2x32x128xf32>
    %cst_17 = arith.constant 1.1920929E-7 : f32
    %86 = vector.broadcast %cst_17 : f32 to vector<2x32x128xf32>
    %87 = arith.mulf %85, %86 : vector<2x32x128xf32>
    %cst_18 = arith.constant 5.000000e-01 : f32
    %88 = vector.broadcast %cst_18 : f32 to vector<2x32x128xf32>
    %89 = arith.subf %87, %88 : vector<2x32x128xf32>
    %90 = arith.mulf %89, %89 : vector<2x32x128xf32>
    %cst_19 = arith.constant -39.6968307 : f32
    %91 = vector.broadcast %cst_19 : f32 to vector<2x32x128xf32>
    %92 = arith.mulf %91, %90 : vector<2x32x128xf32>
    %cst_20 = arith.constant 220.946106 : f32
    %93 = vector.broadcast %cst_20 : f32 to vector<2x32x128xf32>
    %94 = arith.addf %92, %93 : vector<2x32x128xf32>
    %95 = arith.mulf %94, %90 : vector<2x32x128xf32>
    %cst_21 = arith.constant -275.928497 : f32
    %96 = vector.broadcast %cst_21 : f32 to vector<2x32x128xf32>
    %97 = arith.addf %95, %96 : vector<2x32x128xf32>
    %98 = arith.mulf %97, %90 : vector<2x32x128xf32>
    %cst_22 = arith.constant 138.357758 : f32
    %99 = vector.broadcast %cst_22 : f32 to vector<2x32x128xf32>
    %100 = arith.addf %98, %99 : vector<2x32x128xf32>
    %101 = arith.mulf %100, %90 : vector<2x32x128xf32>
    %cst_23 = arith.constant -30.6647987 : f32
    %102 = vector.broadcast %cst_23 : f32 to vector<2x32x128xf32>
    %103 = arith.addf %101, %102 : vector<2x32x128xf32>
    %104 = arith.mulf %103, %90 : vector<2x32x128xf32>
    %cst_24 = arith.constant 2.50662827 : f32
    %105 = vector.broadcast %cst_24 : f32 to vector<2x32x128xf32>
    %106 = arith.addf %104, %105 : vector<2x32x128xf32>
    %107 = arith.mulf %106, %89 : vector<2x32x128xf32>
    %cst_25 = arith.constant -54.4760971 : f32
    %108 = vector.broadcast %cst_25 : f32 to vector<2x32x128xf32>
    %109 = arith.mulf %108, %90 : vector<2x32x128xf32>
    %cst_26 = arith.constant 161.585831 : f32
    %110 = vector.broadcast %cst_26 : f32 to vector<2x32x128xf32>
    %111 = arith.addf %109, %110 : vector<2x32x128xf32>
    %112 = arith.mulf %111, %90 : vector<2x32x128xf32>
    %cst_27 = arith.constant -155.698975 : f32
    %113 = vector.broadcast %cst_27 : f32 to vector<2x32x128xf32>
    %114 = arith.addf %112, %113 : vector<2x32x128xf32>
    %115 = arith.mulf %114, %90 : vector<2x32x128xf32>
    %cst_28 = arith.constant 66.8013153 : f32
    %116 = vector.broadcast %cst_28 : f32 to vector<2x32x128xf32>
    %117 = arith.addf %115, %116 : vector<2x32x128xf32>
    %118 = arith.mulf %117, %90 : vector<2x32x128xf32>
    %cst_29 = arith.constant -13.2806816 : f32
    %119 = vector.broadcast %cst_29 : f32 to vector<2x32x128xf32>
    %120 = arith.addf %118, %119 : vector<2x32x128xf32>
    %121 = arith.mulf %120, %90 : vector<2x32x128xf32>
    %cst_30 = arith.constant 1.000000e+00 : f32
    %122 = vector.broadcast %cst_30 : f32 to vector<2x32x128xf32>
    %123 = arith.addf %121, %122 : vector<2x32x128xf32>
    %124 = arith.divf %107, %123 : vector<2x32x128xf32>
    %cst_31 = arith.constant 1.000000e+00 : f32
    %125 = vector.broadcast %cst_31 : f32 to vector<2x32x128xf32>
    %126 = arith.subf %125, %87 : vector<2x32x128xf32>
    %127 = arith.minimumf %87, %126 : vector<2x32x128xf32>
    %cst_32 = arith.constant 9.99999996E-13 : f32
    %128 = vector.broadcast %cst_32 : f32 to vector<2x32x128xf32>
    %129 = arith.maximumf %127, %128 : vector<2x32x128xf32>
    %130 = math.log %129 : vector<2x32x128xf32>
    %cst_33 = arith.constant -2.000000e+00 : f32
    %131 = vector.broadcast %cst_33 : f32 to vector<2x32x128xf32>
    %132 = arith.mulf %131, %130 : vector<2x32x128xf32>
    %133 = math.sqrt %132 : vector<2x32x128xf32>
    %cst_34 = arith.constant -0.0077848942 : f32
    %134 = vector.broadcast %cst_34 : f32 to vector<2x32x128xf32>
    %135 = arith.mulf %134, %133 : vector<2x32x128xf32>
    %cst_35 = arith.constant -0.322396457 : f32
    %136 = vector.broadcast %cst_35 : f32 to vector<2x32x128xf32>
    %137 = arith.addf %135, %136 : vector<2x32x128xf32>
    %138 = arith.mulf %137, %133 : vector<2x32x128xf32>
    %cst_36 = arith.constant -2.40075827 : f32
    %139 = vector.broadcast %cst_36 : f32 to vector<2x32x128xf32>
    %140 = arith.addf %138, %139 : vector<2x32x128xf32>
    %141 = arith.mulf %140, %133 : vector<2x32x128xf32>
    %cst_37 = arith.constant -2.54973245 : f32
    %142 = vector.broadcast %cst_37 : f32 to vector<2x32x128xf32>
    %143 = arith.addf %141, %142 : vector<2x32x128xf32>
    %144 = arith.mulf %143, %133 : vector<2x32x128xf32>
    %cst_38 = arith.constant 4.37466431 : f32
    %145 = vector.broadcast %cst_38 : f32 to vector<2x32x128xf32>
    %146 = arith.addf %144, %145 : vector<2x32x128xf32>
    %147 = arith.mulf %146, %133 : vector<2x32x128xf32>
    %cst_39 = arith.constant 2.938164 : f32
    %148 = vector.broadcast %cst_39 : f32 to vector<2x32x128xf32>
    %149 = arith.addf %147, %148 : vector<2x32x128xf32>
    %cst_40 = arith.constant 0.00778469583 : f32
    %150 = vector.broadcast %cst_40 : f32 to vector<2x32x128xf32>
    %151 = arith.mulf %150, %133 : vector<2x32x128xf32>
    %cst_41 = arith.constant 0.322467119 : f32
    %152 = vector.broadcast %cst_41 : f32 to vector<2x32x128xf32>
    %153 = arith.addf %151, %152 : vector<2x32x128xf32>
    %154 = arith.mulf %153, %133 : vector<2x32x128xf32>
    %cst_42 = arith.constant 2.44513416 : f32
    %155 = vector.broadcast %cst_42 : f32 to vector<2x32x128xf32>
    %156 = arith.addf %154, %155 : vector<2x32x128xf32>
    %157 = arith.mulf %156, %133 : vector<2x32x128xf32>
    %cst_43 = arith.constant 3.7544086 : f32
    %158 = vector.broadcast %cst_43 : f32 to vector<2x32x128xf32>
    %159 = arith.addf %157, %158 : vector<2x32x128xf32>
    %160 = arith.mulf %159, %133 : vector<2x32x128xf32>
    %cst_44 = arith.constant 1.000000e+00 : f32
    %161 = vector.broadcast %cst_44 : f32 to vector<2x32x128xf32>
    %162 = arith.addf %160, %161 : vector<2x32x128xf32>
    %163 = arith.divf %149, %162 : vector<2x32x128xf32>
    %cst_45 = arith.constant 5.000000e-01 : f32
    %164 = vector.broadcast %cst_45 : f32 to vector<2x32x128xf32>
    %165 = arith.cmpf ogt, %87, %164 : vector<2x32x128xf32>
    %cst_46 = arith.constant 0.000000e+00 : f32
    %166 = vector.broadcast %cst_46 : f32 to vector<2x32x128xf32>
    %167 = arith.subf %166, %163 : vector<2x32x128xf32>
    %168 = arith.select %165, %167, %163 : vector<2x32x128xi1>, vector<2x32x128xf32>
    %cst_47 = arith.constant 2.425000e-02 : f32
    %169 = vector.broadcast %cst_47 : f32 to vector<2x32x128xf32>
    %170 = arith.cmpf olt, %127, %169 : vector<2x32x128xf32>
    %171 = arith.select %170, %168, %124 : vector<2x32x128xi1>, vector<2x32x128xf32>
    %cst_48 = arith.constant 9.99999974E-5 : f32
    %172 = vector.broadcast %cst_48 : f32 to vector<2x32x128xf32>
    %173 = arith.mulf %171, %172 : vector<2x32x128xf32>
    %cst_49 = arith.constant 0.000000e+00 : f32
    %174 = vector.broadcast %cst_49 : f32 to vector<2x32x128xf32>
    %175 = arith.addf %173, %174 : vector<2x32x128xf32>
    %cst_50 = arith.constant -2.000000e-04 : f32
    %cst_51 = arith.constant 2.000000e-04 : f32
    %176 = vector.broadcast %cst_50 : f32 to vector<2x32x128xf32>
    %177 = arith.maximumf %176, %175 : vector<2x32x128xf32>
    %178 = vector.broadcast %cst_51 : f32 to vector<2x32x128xf32>
    %179 = arith.minimumf %178, %177 : vector<2x32x128xf32>
    %c0_52 = arith.constant 0 : index
    %c0_53 = arith.constant 0 : index
    %c0_54 = arith.constant 0 : index
    %180 = vector.load %arg3[%c0_52, %c0_53, %c0_54] : memref<2x32x128xf32, #tpu.memory_space<vmem>>, vector<2x32x128xf32>
    %cst_55 = arith.constant 0.000000e+00 : f32
    %181 = vector.broadcast %cst_55 : f32 to vector<2x32x128xf32>
    %182 = arith.select %58, %179, %181 : vector<2x32x128xi1>, vector<2x32x128xf32>
    %183 = arith.addf %180, %182 : vector<2x32x128xf32>
    %c0_56 = arith.constant 0 : index
    %c0_57 = arith.constant 0 : index
    %c0_58 = arith.constant 0 : index
    %184 = vector.load %arg4[%c0_56, %c0_57, %c0_58] : memref<2x32x128xf32, #tpu.memory_space<vmem>>, vector<2x32x128xf32>
    tpu.vector_store %arg4[%c0_56, %c0_57, %c0_58], %183 {strides = array<i32>} : memref<2x32x128xf32, #tpu.memory_space<vmem>>, vector<2x32x128xf32>,
    return
  }
  func.func @transform_0(%arg0: i32, %arg1: i32, %arg2: memref<1xi32, #tpu.memory_space<smem>>) -> (i32, i32, i32) {
    %c0_i32 = arith.constant 0 : i32
    %c0_i32_0 = arith.constant 0 : i32
    return %arg0, %arg1, %c0_i32 : i32, i32, i32
  }
  func.func @transform_1(%arg0: i32, %arg1: i32, %arg2: memref<1xi32, #tpu.memory_space<smem>>) -> (i32, i32, i32) {
    %c0_i32 = arith.constant 0 : i32
    %c0_i32_0 = arith.constant 0 : i32
    return %arg0, %arg1, %c0_i32 : i32, i32, i32
  }
}

</mosaic_0001>

<bundles_post_ra>
// kernel: tpu_custom_call.1
= control target key start
LH: loop header
LB: loop body
LE: loop exit
PB: predicated region body
PF: predicated region fallthrough
CT: control target
= control target key end

     0   :  { %8 = vsyncpa [#allocation5], 0  ;;  %s1828_s0 = inlined_call_operand.<no memory space> [shape: s32[1], index: 0, kind: input, shape index: {}]   ;;  %s1829_s1 = inlined_call_operand.hbm [shape: f32[2,32,128], index: 1, kind: input, shape index: {}]   ;;  %s1830_s2 = inlined_call_operand.hbm [shape: f32[2,32,128], index: 2, kind: output, shape index: {}]  }
   0x1   :  { %9 = vsyncpa [#allocation6], 0  ;;  %s1129_s9 = smov [#allocation4]   ;;  %s1081_s13 = scalar_lea.hbm %s1829_s1, 1024 }
   0x2   :  { %s15_s10 = sshll.u32 %s1129_s9, 4  ;;  %p1082_p0 = scmp.ne.s32.totalorder %s1829_s1, %s1081_s13  ;;  %s16_s10 = int_to_ptr.vmem [resolvable:$true] %s15_s10 }
   0x3   :  { %p1085_p1 = scmp.lt.u32.totalorder %s1081_s13, %s1829_s1 }
   0x5   :  { %p1087_p2 = pnand %p1085_p1, %p1082_p0 }
   0x7   :  { %1090 = shalt.err (!%p1087_p2)
}
   0x8   :  { %s1091_s18 = scalar_lea.vmem %s16_s10, 1024  ;;  %p1096_p4 = scmp.lt.s32.totalorder %s16_s10, %s16_s10 }
   0x9   :  { %p1092_p3 = scmp.ne.s32.totalorder %s16_s10, %s1091_s18  ;;  %p1097_p5 = scmp.lt.s32.totalorder %s1091_s18, %s1091_s18 }
   0xb   :  { %p1098_p6 = por %p1097_p5, %p1096_p4 }
   0xd   :  { %p1099_p7 = pnand %p1098_p6, %p1092_p3 }
   0xf   :  { %1102 = shalt.err (!%p1099_p7)
}
  0x10   :  { %s1130_s19 = smov 128   ;;  %s1131_s20 = smov 8  }
  0x11   :  { %21 = dma.hbm_to_vmem [thread:$0]  %s1829_s1, 1024, %s16_s10, [#allocation5], %s1130_s19, %s1130_s19, %s1131_s20  }
  0x12   :  { %1125 = dma.done.wait [#allocation5], 1024  }
  0x13   :  { %1126 = vsyncadd [#allocation5], 4294966272  ;;  %v30_v0 = vlaneseq  ;;  %s102_s24 = sadd.s32 625341585, %s1828_s0  ;;  %s240_s27 = sadd.s32 1759714724, %s1828_s0 }
  0x14   :  { %v1169_v41 = vstv %s102_s24  ;;  %v241_v47 = vstv %s240_s27  ;;  %s1132_s0 = smov [#allocation7]  }
  0x15   :  { %v41_v1 = vand.u32 127, %v30_v0  ;;  %v31_v5 = vshrl.u32 %v30_v0, 7  ;;  %s935_s28 = sshll.u32 %s1132_s0, 4  ;;  %s936_s28 = int_to_ptr.vmem [resolvable:$true] %s935_s28 }
  0x16   :  { %s1103_s29 = scalar_lea.vmem %s936_s28, 1024  ;;  %p1108_p9 = scmp.lt.s32.totalorder %s936_s28, %s936_s28 }
  0x17   :  { %v42_v2 = vcvt.s32.f32 %v41_v1  ;;  %v32_v7 = vadd.s32 8, %v31_v5  ;;  %v33_v8 = vadd.s32 16, %v31_v5  ;;  %v34_v9 = vadd.s32 24, %v31_v5  ;;  %p1104_p8 = scmp.ne.s32.totalorder %s936_s28, %s1103_s29  ;;  %p1109_p10 = scmp.lt.s32.totalorder %s1103_s29, %s1103_s29 }
  0x18   :  { %v48_v10 = vmul.u32 4, %v31_v5  ;;  %v78_v11 = vmul.u32 128, %v31_v5  ;;  %v74_v17 = vadd.s32 32, %v31_v5 }
  0x19   :  { %v43_v3 = vadd.f32 0.5, %v42_v2  ;;  %v49_v13 = vmul.u32 4, %v32_v7  ;;  %v50_v14 = vmul.u32 4, %v33_v8  ;;  %v75_v19 = vadd.s32 32, %v32_v7  ;;  %p1110_p11 = por %p1109_p10, %p1108_p9 }
  0x1a   :  { %v51_v15 = vmul.u32 4, %v34_v9  ;;  %v79_v16 = vmul.u32 128, %v32_v7  ;;  %v76_v20 = vadd.s32 32, %v33_v8  ;;  %v56_v21 = vadd.s32 128, %v48_v10 }
  0x1b   :  { %v44_v4 = vmul.f32 0.03125, %v43_v3  ;;  %v80_v18 = vmul.u32 128, %v33_v8  ;;  %v57_v22 = vadd.s32 128, %v49_v13  ;;  %v77_v24 = vadd.s32 32, %v34_v9  ;;  %p1111_p12 = pnand %p1110_p11, %p1104_p8 }
  0x1c   :  { %v58_v25 = vadd.s32 128, %v50_v14  ;;  %v59_v26 = vadd.s32 128, %v51_v15  ;;  %v86_v27 = vadd.s32 %v78_v11, %v41_v1  ;;  %v87_v28 = vadd.s32 %v79_v16, %v41_v1 }
  0x1d   :  { %v1011_v6 = vtrunc.f32 %v44_v4  ;;  %v81_v30 = vmul.u32 128, %v34_v9  ;;  %v82_v31 = vmul.u32 128, %v74_v17  ;;  %v88_v32 = vadd.s32 %v80_v18, %v41_v1 }
  0x1e   :  { %v83_v35 = vmul.u32 128, %v75_v19  ;;  %v84_v36 = vmul.u32 128, %v76_v20 }
  0x1f   :  { %v1012_v12 = vcvt.f32.s32 %v1011_v6  ;;  %v85_v39 = vmul.u32 128, %v77_v24  ;;  %v232_v42 = vmul.u32 2654435761, %v86_v27  ;;  %v89_v49 = vadd.s32 %v81_v30, %v41_v1 }
  0x20   :  { %v233_v43 = vmul.u32 2654435761, %v87_v28  ;;  %v234_v46 = vmul.u32 2654435761, %v88_v32  ;;  %v90_v52 = vadd.s32 %v82_v31, %v41_v1  ;;  %v91_v56 = vadd.s32 %v83_v35, %v41_v1 }
  0x21   :  { %v60_v23 = vadd.s32 %v1012_v12, %v48_v10  ;;  %v61_v29 = vadd.s32 %v1012_v12, %v49_v13  ;;  %v62_v33 = vadd.s32 %v1012_v12, %v50_v14  ;;  %v63_v34 = vadd.s32 %v1012_v12, %v51_v15 }
  0x22   :  { %v64_v37 = vadd.s32 %v1012_v12, %v56_v21  ;;  %v65_v38 = vadd.s32 %v1012_v12, %v57_v22  ;;  %v1171_v44 = vadd.s32 %v1012_v12, %v58_v25  ;;  %v1173_v48 = vadd.s32 %v1012_v12, %v59_v26 }
  0x23   :  { %v94_v40 = vmul.u32 2654435761, %v60_v23  ;;  %v95_v45 = vmul.u32 2654435761, %v61_v29  ;;  %v92_v57 = vadd.s32 %v84_v36, %v41_v1  ;;  %v93_v58 = vadd.s32 %v85_v39, %v41_v1 }
  0x24   :  { %v96_v50 = vmul.u32 2654435761, %v62_v33  ;;  %v97_v51 = vmul.u32 2654435761, %v63_v34  ;;  %v242_v59 = vxor.u32 %v241_v47, %v232_v42  ;;  %v243_v62 = vxor.u32 %v241_v47, %v233_v43 }
  0x25   :  { %v98_v53 = vmul.u32 2654435761, %v64_v37  ;;  %v99_v54 = vmul.u32 2654435761, %v65_v38  ;;  %v1176_v55 = vxor.u32 %v1169_v41, %v94_v40  ;;  %v1180_v61 = vxor.u32 %v1169_v41, %v95_v45 }
  0x26   :  { %v100_v60 = vmul.u32 2654435761, %v1171_v44  ;;  %v244_v63 = vxor.u32 %v241_v47, %v234_v46  ;;  %v101_v0 = vmul.u32 2654435761, %v1173_v48  ;;  %v1184_v2 = vxor.u32 %v1169_v41, %v96_v50 }
  0x27   :  { %v1187_v3 = vxor.u32 %v1169_v41, %v97_v51  ;;  %v235_v4 = vmul.u32 2654435761, %v89_v49  ;;  %v1190_v5 = vxor.u32 %v1169_v41, %v98_v53  ;;  %v1193_v1 = vxor.u32 %v1169_v41, %v99_v54 }
  0x28   :  { %v947_v6 = vshrl.u32 %v1176_v55, 16  ;;  %v236_v7 = vmul.u32 2654435761, %v90_v52  ;;  %v237_v8 = vmul.u32 2654435761, %v91_v56  ;;  %v971_v11 = vshrl.u32 %v242_v59, 16 }
  0x29   :  { %v238_v9 = vmul.u32 2654435761, %v92_v57  ;;  %v245_v10 = vxor.u32 %v241_v47, %v235_v4  ;;  %v239_v12 = vmul.u32 2654435761, %v93_v58  ;;  %v972_v14 = vshrl.u32 %v243_v62, 16 }
  0x2a   :  { %v246_v13 = vxor.u32 %v241_v47, %v236_v7  ;;  %v973_v15 = vshrl.u32 %v244_v63, 16  ;;  %v247_v16 = vxor.u32 %v241_v47, %v237_v8  ;;  %v266_v19 = vxor.u32 %v971_v11, %v242_v59 }
  0x2b   :  { %v248_v17 = vxor.u32 %v241_v47, %v238_v9  ;;  %v974_v18 = vshrl.u32 %v245_v10, 16  ;;  %v249_v20 = vxor.u32 %v241_v47, %v239_v12  ;;  %v267_v22 = vxor.u32 %v972_v14, %v243_v62 }
  0x2c   :  { %v975_v21 = vshrl.u32 %v246_v13, 16  ;;  %v268_v23 = vxor.u32 %v973_v15, %v244_v63  ;;  %v976_v24 = vshrl.u32 %v247_v16, 16  ;;  %v274_v27 = vmul.u32 2246822507, %v266_v19 }
  0x2d   :  { %v977_v25 = vshrl.u32 %v248_v17, 16  ;;  %v269_v26 = vxor.u32 %v974_v18, %v245_v10  ;;  %v978_v28 = vshrl.u32 %v249_v20, 16  ;;  %v275_v30 = vmul.u32 2246822507, %v267_v22 }
  0x2e   :  { %v270_v29 = vxor.u32 %v975_v21, %v246_v13  ;;  %v276_v31 = vmul.u32 2246822507, %v268_v23  ;;  %v271_v32 = vxor.u32 %v976_v24, %v247_v16  ;;  %v979_v35 = vshrl.u32 %v274_v27, 13 }
  0x2f   :  { %v272_v33 = vxor.u32 %v977_v25, %v248_v17  ;;  %v277_v34 = vmul.u32 2246822507, %v269_v26  ;;  %v273_v36 = vxor.u32 %v978_v28, %v249_v20  ;;  %v980_v38 = vshrl.u32 %v275_v30, 13 }
  0x30   :  { %v278_v37 = vmul.u32 2246822507, %v270_v29  ;;  %v981_v39 = vshrl.u32 %v276_v31, 13  ;;  %v279_v40 = vmul.u32 2246822507, %v271_v32  ;;  %v298_v45 = vxor.u32 %v979_v35, %v274_v27 }
  0x31   :  { %v280_v42 = vmul.u32 2246822507, %v272_v33  ;;  %v982_v43 = vshrl.u32 %v277_v34, 13  ;;  %v281_v46 = vmul.u32 2246822507, %v273_v36  ;;  %v299_v49 = vxor.u32 %v980_v38, %v275_v30 }
  0x32   :  { %v983_v47 = vshrl.u32 %v278_v37, 13  ;;  %v300_v50 = vxor.u32 %v981_v39, %v276_v31  ;;  %v984_v51 = vshrl.u32 %v279_v40, 13  ;;  %v306_v54 = vmul.u32 3266489909, %v298_v45 }
  0x33   :  { %v985_v52 = vshrl.u32 %v280_v42, 13  ;;  %v301_v53 = vxor.u32 %v982_v43, %v277_v34  ;;  %v986_v56 = vshrl.u32 %v281_v46, 13  ;;  %v307_v58 = vmul.u32 3266489909, %v299_v49 }
  0x34   :  { %v302_v57 = vxor.u32 %v983_v47, %v278_v37  ;;  %v308_v59 = vmul.u32 3266489909, %v300_v50  ;;  %v303_v62 = vxor.u32 %v984_v51, %v279_v40  ;;  %v987_v7 = vshrl.u32 %v306_v54, 16 }
  0x35   :  { %v304_v63 = vxor.u32 %v985_v52, %v280_v42  ;;  %v309_v4 = vmul.u32 3266489909, %v301_v53  ;;  %v305_v8 = vxor.u32 %v986_v56, %v281_v46  ;;  %v988_v10 = vshrl.u32 %v307_v58, 16 }
  0x36   :  { %v310_v9 = vmul.u32 3266489909, %v302_v57  ;;  %v989_v11 = vshrl.u32 %v308_v59, 16  ;;  %v311_v12 = vmul.u32 3266489909, %v303_v62  ;;  %v330_v15 = vxor.u32 %v987_v7, %v306_v54 }
  0x37   :  { %v312_v13 = vmul.u32 3266489909, %v304_v63  ;;  %v990_v14 = vshrl.u32 %v309_v4, 16  ;;  %v313_v16 = vmul.u32 3266489909, %v305_v8  ;;  %v331_v18 = vxor.u32 %v988_v10, %v307_v58 }
  0x38   :  { %v991_v17 = vshrl.u32 %v310_v9, 16  ;;  %v332_v19 = vxor.u32 %v989_v11, %v308_v59  ;;  %v948_v20 = vshrl.u32 %v1180_v61, 16  ;;  %v992_v21 = vshrl.u32 %v311_v12, 16 }
  0x39   :  { %v993_v22 = vshrl.u32 %v312_v13, 16  ;;  %v338_v23 = vand.u32 8388607, %v330_v15  ;;  %v994_v24 = vshrl.u32 %v313_v16, 16  ;;  %v333_v25 = vxor.u32 %v990_v14, %v309_v4 }
  0x3a   :  { %v339_v26 = vand.u32 8388607, %v331_v18  ;;  %v340_v27 = vand.u32 8388607, %v332_v19  ;;  %v110_v28 = vxor.u32 %v1169_v41, %v100_v60  ;;  %v111_v29 = vxor.u32 %v1169_v41, %v101_v0 }
  0x3b   :  { %v334_v30 = vxor.u32 %v991_v17, %v310_v9  ;;  %v335_v31 = vxor.u32 %v992_v21, %v311_v12  ;;  %v949_v32 = vshrl.u32 %v1184_v2, 16  ;;  %v950_v33 = vshrl.u32 %v1187_v3, 16 }
  0x3c   :  { %v336_v34 = vxor.u32 %v993_v22, %v312_v13  ;;  %v346_v35 = vcvt.s32.f32 %v338_v23  ;;  %v951_v36 = vshrl.u32 %v1190_v5, 16  ;;  %v952_v37 = vshrl.u32 %v1193_v1, 16 }
  0x3d   :  { %v337_v38 = vxor.u32 %v994_v24, %v313_v16  ;;  %v347_v44 = vcvt.s32.f32 %v339_v26  ;;  %v128_v48 = vxor.u32 %v947_v6, %v1176_v55  ;;  %v129_v41 = vxor.u32 %v948_v20, %v1180_v61 }
  0x3e   :  { %v341_v60 = vand.u32 8388607, %v333_v25  ;;  %v348_v0 = vcvt.s32.f32 %v340_v27  ;;  %v953_v39 = vshrl.u32 %v110_v28, 16  ;;  %v954_v40 = vshrl.u32 %v111_v29, 16 }
  0x3f   :  { %v342_v42 = vand.u32 8388607, %v334_v30  ;;  %v343_v43 = vand.u32 8388607, %v335_v31  ;;  %v130_v45 = vxor.u32 %v949_v32, %v1184_v2  ;;  %v1213_v46 = vxor.u32 %v950_v33, %v1187_v3 }
  0x40   :  { %v344_v47 = vand.u32 8388607, %v336_v34  ;;  %v1215_v49 = vmul.f32 1.1920929e-07, %v346_v35  ;;  %v1218_v50 = vxor.u32 %v951_v36, %v1190_v5  ;;  %v1221_v55 = vxor.u32 %v952_v37, %v1193_v1 }
  0x41   :  { %v345_v61 = vand.u32 8388607, %v337_v38  ;;  %v1223_v6 = vmul.f32 1.1920929e-07, %v347_v44  ;;  %v136_v51 = vmul.u32 2246822507, %v128_v48  ;;  %v349_v52 = vcvt.s32.f32 %v341_v60 }
  0x42   :  { %v1225_v53 = vmul.f32 1.1920929e-07, %v348_v0  ;;  %v1228_v2 = vadd.f32 -0.5, %v1215_v49  ;;  %v137_v3 = vmul.u32 2246822507, %v129_v41  ;;  %v350_v54 = vcvt.s32.f32 %v342_v42 }
  0x43   :  { %v351_v56 = vcvt.s32.f32 %v343_v43  ;;  %v1231_v57 = vadd.f32 -0.5, %v1223_v6  ;;  %v134_v5 = vxor.u32 %v953_v39, %v110_v28  ;;  %v138_v58 = vmul.u32 2246822507, %v130_v45 }
  0x44   :  { %v352_v1 = vcvt.s32.f32 %v344_v47  ;;  %v1234_v59 = vadd.f32 -0.5, %v1225_v53  ;;  %v135_v62 = vxor.u32 %v954_v40, %v111_v29  ;;  %v139_v63 = vmul.u32 2246822507, %v1213_v46 }
  0x45   :  { %v140_v4 = vmul.u32 2246822507, %v1218_v50  ;;  %v353_v7 = vcvt.s32.f32 %v345_v61  ;;  %v141_v8 = vmul.u32 2246822507, %v1221_v55  ;;  %v955_v9 = vshrl.u32 %v136_v51, 13 }
  0x46   :  { %v1239_v10 = vmul.f32 1.1920929e-07, %v349_v52  ;;  %v1243_v11 = vmul.f32 %v1228_v2, %v1228_v2  ;;  %v956_v12 = vshrl.u32 %v137_v3, 13  ;;  %v1245_v13 = vmul.f32 1.1920929e-07, %v350_v54 }
  0x47   :  { %v1247_v14 = vmul.f32 1.1920929e-07, %v351_v56  ;;  %v1251_v15 = vmul.f32 %v1231_v57, %v1231_v57  ;;  %v1253_v16 = vmul.f32 1.1920929e-07, %v352_v1  ;;  %v1260_v18 = vmul.f32 %v1234_v59, %v1234_v59 }
  0x48   :  { %v1256_v17 = vadd.f32 -0.5, %v1239_v10  ;;  %v378_v19 = vmul.f32 -39.69683, %v1243_v11  ;;  %v142_v20 = vmul.u32 2246822507, %v134_v5  ;;  %v1263_v21 = vmul.f32 1.1920929e-07, %v353_v7 }
  0x49   :  { %v1266_v22 = vadd.f32 -0.5, %v1245_v13  ;;  %v379_v23 = vmul.f32 -39.69683, %v1251_v15  ;;  %v143_v24 = vmul.u32 2246822507, %v135_v62  ;;  %v1270_v25 = vadd.f32 -0.5, %v1247_v14 }
  0x4a   :  { %v1273_v26 = vadd.f32 -0.5, %v1253_v16  ;;  %v380_v27 = vmul.f32 -39.69683, %v1260_v18  ;;  %v957_v28 = vshrl.u32 %v138_v58, 13  ;;  %v958_v29 = vshrl.u32 %v139_v63, 13 }
  0x4b   :  { %v959_v30 = vshrl.u32 %v140_v4, 13  ;;  %v1277_v31 = vadd.f32 -0.5, %v1263_v21  ;;  %v960_v32 = vshrl.u32 %v141_v8, 13  ;;  %v160_v33 = vxor.u32 %v955_v9, %v136_v51 }
  0x4c   :  { %1845 = vst [vmem:[#allocation10_spill] sm:$0xff] %v1273_v26  ;;  %v1281_v34 = vmul.f32 %v1256_v17, %v1256_v17  ;;  %v386_v35 = vadd.f32 220.9461, %v378_v19  ;;  %v961_v36 = vshrl.u32 %v142_v20, 13  ;;  %v161_v37 = vxor.u32 %v956_v12, %v137_v3 }
  0x4d   :  { %1846 = vst [vmem:[#allocation11_spill] sm:$0xff] %v1277_v31  ;;  %v1285_v38 = vmul.f32 %v1266_v22, %v1266_v22  ;;  %v387_v44 = vadd.f32 220.9461, %v379_v23  ;;  %v1289_v48 = vmul.f32 %v1270_v25, %v1270_v25  ;;  %v1293_v41 = vmul.f32 %v1273_v26, %v1273_v26 }
  0x4e   :  { %v381_v60 = vmul.f32 -39.69683, %v1281_v34  ;;  %v388_v0 = vadd.f32 220.9461, %v380_v27  ;;  %v962_v39 = vshrl.u32 %v143_v24, 13  ;;  %v162_v40 = vxor.u32 %v957_v28, %v138_v58 }
  0x4f   :  { %v1298_v42 = vmul.f32 %v1277_v31, %v1277_v31  ;;  %v382_v43 = vmul.f32 -39.69683, %v1285_v38  ;;  %v163_v45 = vxor.u32 %v958_v29, %v139_v63  ;;  %v383_v46 = vmul.f32 -39.69683, %v1289_v48 }
  0x50   :  { %v384_v47 = vmul.f32 -39.69683, %v1293_v41  ;;  %v394_v50 = vmul.f32 %v386_v35, %v1243_v11  ;;  %v164_v55 = vxor.u32 %v959_v30, %v140_v4  ;;  %v165_v61 = vxor.u32 %v960_v32, %v141_v8 }
  0x51   :  { %v385_v51 = vmul.f32 -39.69683, %v1298_v42  ;;  %v395_v52 = vmul.f32 %v387_v44, %v1251_v15  ;;  %v168_v3 = vmul.u32 3266489909, %v160_v33  ;;  %v169_v54 = vmul.u32 3266489909, %v161_v37 }
  0x52   :  { %v389_v56 = vadd.f32 220.9461, %v381_v60  ;;  %v396_v5 = vmul.f32 %v388_v0, %v1260_v18  ;;  %v166_v58 = vxor.u32 %v961_v36, %v142_v20  ;;  %v167_v1 = vxor.u32 %v962_v39, %v143_v24 }
  0x53   :  { %v170_v62 = vmul.u32 3266489909, %v162_v40  ;;  %v390_v63 = vadd.f32 220.9461, %v382_v43  ;;  %v391_v7 = vadd.f32 220.9461, %v383_v46 }
  0x54   :  { %v392_v9 = vadd.f32 220.9461, %v384_v47  ;;  %v402_v12 = vadd.f32 -275.9285, %v394_v50  ;;  %v171_v19 = vmul.u32 3266489909, %v163_v45  ;;  %v397_v28 = vmul.f32 %v389_v56, %v1281_v34 }
  0x55   :  { %v393_v23 = vadd.f32 220.9461, %v385_v51  ;;  %v403_v4 = vadd.f32 -275.9285, %v395_v52  ;;  %v172_v8 = vmul.u32 3266489909, %v164_v55  ;;  %v398_v35 = vmul.f32 %v390_v63, %v1285_v38 }
  0x56   :  { %v173_v27 = vmul.u32 3266489909, %v165_v61  ;;  %v404_v29 = vadd.f32 -275.9285, %v396_v5  ;;  %v174_v30 = vmul.u32 3266489909, %v166_v58  ;;  %v399_v24 = vmul.f32 %v391_v7, %v1289_v48 }
  0x57   :  { %v175_v32 = vmul.u32 3266489909, %v167_v1  ;;  %v963_v33 = vshrl.u32 %v168_v3, 16  ;;  %v964_v20 = vshrl.u32 %v169_v54, 16  ;;  %v400_v36 = vmul.f32 %v392_v9, %v1293_v41 }
  0x58   :  { %v410_v37 = vmul.f32 %v402_v12, %v1243_v11  ;;  %v965_v44 = vshrl.u32 %v170_v62, 16  ;;  %v966_v60 = vshrl.u32 %v171_v19, 16  ;;  %v401_v0 = vmul.f32 %v393_v23, %v1298_v42 }
  0x59   :  { %v411_v39 = vmul.f32 %v403_v4, %v1251_v15  ;;  %v967_v40 = vshrl.u32 %v172_v8, 16  ;;  %v968_v43 = vshrl.u32 %v173_v27, 16  ;;  %v405_v45 = vadd.f32 -275.9285, %v397_v28 }
  0x5a   :  { %v412_v46 = vmul.f32 %v404_v29, %v1260_v18  ;;  %v969_v47 = vshrl.u32 %v174_v30, 16  ;;  %v970_v50 = vshrl.u32 %v175_v32, 16  ;;  %v192_v55 = vxor.u32 %v963_v33, %v168_v3 }
  0x5b   :  { %v406_v61 = vadd.f32 -275.9285, %v398_v35  ;;  %v193_v51 = vxor.u32 %v964_v20, %v169_v54  ;;  %v407_v52 = vadd.f32 -275.9285, %v399_v24  ;;  %v408_v56 = vadd.f32 -275.9285, %v400_v36 }
  0x5c   :  { %v418_v5 = vadd.f32 138.35776, %v410_v37  ;;  %v194_v58 = vxor.u32 %v965_v44, %v170_v62  ;;  %v195_v1 = vxor.u32 %v966_v60, %v171_v19  ;;  %v409_v63 = vadd.f32 -275.9285, %v401_v0 }
  0x5d   :  { %v419_v7 = vadd.f32 138.35776, %v411_v39  ;;  %v196_v9 = vxor.u32 %v967_v40, %v172_v8  ;;  %v197_v12 = vxor.u32 %v968_v43, %v173_v27  ;;  %v413_v23 = vmul.f32 %v405_v45, %v1281_v34 }
  0x5e   :  { %v420_v4 = vadd.f32 138.35776, %v412_v46  ;;  %v198_v28 = vxor.u32 %v969_v47, %v174_v30  ;;  %v199_v31 = vxor.u32 %v970_v50, %v175_v32  ;;  %v200_v29 = vand.u32 8388607, %v192_v55 }
  0x5f   :  { %v414_v26 = vmul.f32 %v406_v61, %v1285_v38  ;;  %v201_v3 = vand.u32 8388607, %v193_v51  ;;  %v415_v54 = vmul.f32 %v407_v52, %v1289_v48  ;;  %v416_v33 = vmul.f32 %v408_v56, %v1293_v41 }
  0x60   :  { %v426_v62 = vmul.f32 %v418_v5, %v1243_v11  ;;  %v202_v19 = vand.u32 8388607, %v194_v58  ;;  %v203_v35 = vand.u32 8388607, %v195_v1  ;;  %v417_v8 = vmul.f32 %v409_v63, %v1298_v42 }
  0x61   :  { %v427_v27 = vmul.f32 %v419_v7, %v1251_v15  ;;  %v204_v20 = vand.u32 8388607, %v196_v9  ;;  %v205_v24 = vand.u32 8388607, %v197_v12  ;;  %v421_v30 = vadd.f32 138.35776, %v413_v23 }
  0x62   :  { %v428_v32 = vmul.f32 %v420_v4, %v1260_v18  ;;  %v206_v36 = vand.u32 8388607, %v198_v28  ;;  %v207_v37 = vand.u32 8388607, %v199_v31  ;;  %v422_v44 = vadd.f32 138.35776, %v414_v26 }
  0x63   :  { %v208_v60 = vcvt.s32.f32 %v200_v29  ;;  %v423_v0 = vadd.f32 138.35776, %v415_v54  ;;  %v424_v39 = vadd.f32 138.35776, %v416_v33  ;;  %v434_v40 = vadd.f32 -30.664799, %v426_v62 }
  0x64   :  { %v209_v43 = vcvt.s32.f32 %v201_v3  ;;  %v210_v45 = vcvt.s32.f32 %v202_v19  ;;  %v425_v46 = vadd.f32 138.35776, %v417_v8  ;;  %v435_v47 = vadd.f32 -30.664799, %v427_v27 }
  0x65   :  { %v211_v50 = vcvt.s32.f32 %v203_v35  ;;  %v212_v55 = vcvt.s32.f32 %v204_v20  ;;  %v429_v61 = vmul.f32 %v421_v30, %v1281_v34  ;;  %v436_v51 = vadd.f32 -30.664799, %v428_v32 }
  0x66   :  { %v213_v52 = vcvt.s32.f32 %v205_v24  ;;  %v214_v56 = vcvt.s32.f32 %v206_v36  ;;  %v215_v5 = vcvt.s32.f32 %v207_v37  ;;  %v430_v58 = vmul.f32 %v422_v44, %v1285_v38 }
  0x67   :  { %v1325_v31 = vmul.f32 1.1920929e-07, %v208_v60  ;;  %v431_v26 = vmul.f32 %v423_v0, %v1289_v48  ;;  %v432_v1 = vmul.f32 %v424_v39, %v1293_v41  ;;  %v442_v63 = vmul.f32 %v434_v40, %v1243_v11 }
  0x68   :  { %v1330_v7 = vmul.f32 1.1920929e-07, %v209_v43  ;;  %v1332_v9 = vmul.f32 1.1920929e-07, %v210_v45  ;;  %v433_v12 = vmul.f32 %v425_v46, %v1298_v42  ;;  %v443_v23 = vmul.f32 %v435_v47, %v1251_v15 }
  0x69   :  { %1847 = vst [vmem:[#allocation12_spill] sm:$0xff] %v1325_v31  ;;  %v1336_v4 = vmul.f32 1.1920929e-07, %v211_v50  ;;  %v1338_v28 = vmul.f32 1.1920929e-07, %v212_v55  ;;  %v437_v29 = vadd.f32 -30.664799, %v429_v61  ;;  %v444_v3 = vmul.f32 %v436_v51, %v1260_v18 }
  0x6a   :  { %1848 = vst [vmem:[#allocation13_spill] sm:$0xff] %v1330_v7  ;;  %1849 = vst [vmem:[#allocation14_spill] sm:$0xff] %v1332_v9  ;;  %v1341_v54 = vmul.f32 1.1920929e-07, %v213_v52  ;;  %v1343_v33 = vmul.f32 1.1920929e-07, %v214_v56  ;;  %v1345_v62 = vmul.f32 1.1920929e-07, %v215_v5  ;;  %v562_v46 = vsub.f32 1.0, %v1215_v49 }
  0x6b   :  { %1850 = vst [vmem:[#allocation15_spill] sm:$0xff] %v1336_v4  ;;  %1851 = vst [vmem:[#allocation16_spill] sm:$0xff] %v1338_v28  ;;  %v438_v19 = vadd.f32 -30.664799, %v430_v58  ;;  %v439_v35 = vadd.f32 -30.664799, %v431_v26  ;;  %v445_v32 = vmul.f32 %v437_v29, %v1281_v34 }
  0x6c   :  { %1852 = vst [vmem:[#allocation17_spill] sm:$0xff] %v1341_v54  ;;  %1853 = vst [vmem:[#allocation18_spill] sm:$0xff] %v1343_v33  ;;  %v440_v8 = vadd.f32 -30.664799, %v432_v1  ;;  %v1347_v27 = vadd.f32 2.5066283, %v442_v63  ;;  %v1376_v1 = vmin.f32 %v1215_v49, %v562_v46 }
  0x6d   :  { %1854 = vst [vmem:[#allocation19_spill] sm:$0xff] %v1345_v62  ;;  %v1349_v20 = vadd.f32 -30.664799, %v433_v12  ;;  %v1351_v24 = vadd.f32 2.5066283, %v443_v23  ;;  %v1360_v60 = vmul.f32 %v438_v19, %v1285_v38  ;;  %v563_v47 = vsub.f32 1.0, %v1223_v6 }
  0x6e   :  { %v466_v30 = vmul.f32 -54.476097, %v1243_v11  ;;  %v1355_v36 = vadd.f32 2.5066283, %v444_v3  ;;  %v467_v37 = vmul.f32 -54.476097, %v1251_v15  ;;  %v447_v28 = vmul.f32 %v439_v35, %v1289_v48 }
  0x6f   :  { %v468_v44 = vmul.f32 -54.476097, %v1260_v18  ;;  %v469_v0 = vmul.f32 -54.476097, %v1281_v34  ;;  %v470_v39 = vmul.f32 -54.476097, %v1285_v38  ;;  %v1379_v63 = vmin.f32 %v1223_v6, %v563_v47 }
  0x70   :  { %v471_v40 = vmul.f32 -54.476097, %v1289_v48  ;;  %v472_v43 = vmul.f32 -54.476097, %v1293_v41  ;;  %v473_v45 = vmul.f32 -54.476097, %v1298_v42 }
  0x71   :  { %v474_v50 = vadd.f32 161.58583, %v466_v30  ;;  %v564_v55 = vsub.f32 1.0, %v1225_v53  ;;  %v565_v61 = vsub.f32 1.0, %v1239_v10  ;;  %v566_v51 = vsub.f32 1.0, %v1245_v13 }
  0x72   :  { %v475_v52 = vadd.f32 161.58583, %v467_v37  ;;  %v567_v56 = vsub.f32 1.0, %v1247_v14  ;;  %v568_v5 = vsub.f32 1.0, %v1253_v16  ;;  %v569_v58 = vsub.f32 1.0, %v1263_v21 }
  0x73   :  { %v476_v26 = vadd.f32 161.58583, %v468_v44  ;;  %v1382_v12 = vmin.f32 %v1225_v53, %v564_v55  ;;  %v477_v23 = vadd.f32 161.58583, %v469_v0  ;;  %v1385_v29 = vmin.f32 %v1239_v10, %v565_v61 }
  0x74   :  { %v1388_v3 = vmin.f32 %v1245_v13, %v566_v51  ;;  %v1391_v19 = vmin.f32 %v1247_v14, %v567_v56  ;;  %v478_v30 = vadd.f32 161.58583, %v470_v39  ;;  %v479_v37 = vadd.f32 161.58583, %v471_v40 }
  0x75   :  { %v1394_v44 = vmin.f32 %v1253_v16, %v568_v5  ;;  %v578_v46 = vmax.f32 %v1376_v1, 1e-12  ;;  %v1398_v47 = vmin.f32 %v1263_v21, %v569_v58  ;;  %v579_v0 = vmax.f32 %v1379_v63, 1e-12 }
  0x76   :  { %v580_v55 = vmax.f32 %v1382_v12, 1e-12  ;;  %v581_v61 = vmax.f32 %v1385_v29, 1e-12  ;;  %v482_v51 = vmul.f32 %v474_v50, %v1243_v11  ;;  %v483_v56 = vmul.f32 %v475_v52, %v1251_v15 }
  0x77   :  { %1855 = vst [vmem:[#allocation20_spill] sm:$0xff] %v1394_v44  ;;  %1856 = vst [vmem:[#allocation21_spill] sm:$0xff] %v1398_v47  ;;  %v582_v39 = vmax.f32 %v1388_v3, 1e-12  ;;  %1017 = vlog2.f32 %v578_v46  ;;  %v480_v40 = vadd.f32 161.58583, %v472_v43  ;;  %v484_v5 = vmul.f32 %v476_v26, %v1260_v18 }
  0x78   :  { %v583_v62 = vmax.f32 %v1391_v19, 1e-12  ;;  %1019 = vlog2.f32 %v579_v0  ;;  %v481_v58 = vadd.f32 161.58583, %v473_v45  ;;  %v485_v33 = vmul.f32 %v477_v23, %v1281_v34 }
  0x79   :  { %v584_v54 = vmax.f32 %v1394_v44, 1e-12  ;;  %1021 = vlog2.f32 %v580_v55  ;;  %v486_v50 = vmul.f32 %v478_v30, %v1285_v38  ;;  %v585_v52 = vmax.f32 %v1398_v47, 1e-12 }
  0x7a   :  { %1023 = vlog2.f32 %v581_v61  ;;  %v487_v43 = vmul.f32 %v479_v37, %v1289_v48  ;;  %v490_v46 = vadd.f32 -155.69897, %v482_v51  ;;  %v491_v26 = vadd.f32 -155.69897, %v483_v56 }
  0x7b   :  { %1025 = vlog2.f32 %v582_v39  ;;  %v448_v0 = vmul.f32 %v440_v8, %v1293_v41  ;;  %v488_v45 = vmul.f32 %v480_v40, %v1293_v41  ;;  %v492_v23 = vadd.f32 -155.69897, %v484_v5 }
  0x7c   :  { %1027 = vlog2.f32 %v583_v62  ;;  %v453_v4 = vadd.f32 2.5066283, %v445_v32  ;;  %v489_v55 = vmul.f32 %v481_v58, %v1298_v42  ;;  %v493_v35 = vadd.f32 -155.69897, %v485_v33 }
  0x7d   :  { %1029 = vlog2.f32 %v584_v54  ;;  %v449_v30 = vmul.f32 %v1349_v20, %v1298_v42  ;;  %v1421_v37 = vmul.f32 %v1228_v2, %v1347_v27  ;;  %v494_v61 = vadd.f32 -155.69897, %v486_v50 }
  0x7e   :  { %1031 = vlog2.f32 %v585_v52  ;;  %v454_v8 = vadd.f32 2.5066283, %v1360_v60  ;;  %v495_v51 = vadd.f32 -155.69897, %v487_v43  ;;  %v498_v56 = vmul.f32 %v490_v46, %v1243_v11 }
  0x7f   :  { %v499_v62 = vmul.f32 %v491_v26, %v1251_v15  ;;  %v1428_v33 = vmul.f32 %v1231_v57, %v1351_v24  ;;  %v1432_v54 = vmul.f32 %v1234_v59, %v1355_v36  ;;  %v496_v20 = vadd.f32 -155.69897, %v488_v45 }
  0x80   :  { %v500_v2 = vmul.f32 %v492_v23, %v1260_v18  ;;  %v455_v32 = vadd.f32 2.5066283, %v447_v28  ;;  %v456_v39 = vadd.f32 2.5066283, %v448_v0  ;;  %v497_v60 = vadd.f32 -155.69897, %v489_v55 }
  0x81   :  { %v1018_v27 = vpop.eup %1017  ;;  %v501_v40 = vmul.f32 %v493_v35, %v1281_v34  ;;  %v1436_v58 = vadd.f32 2.5066283, %v449_v30  ;;  %v1439_v50 = vmul.f32 %v1256_v17, %v453_v4  ;;  %v502_v57 = vmul.f32 %v494_v61, %v1285_v38 }
  0x82   :  { %v1020_v5 = vpop.eup %1019  ;;  %v587_v24 = vmul.f32 0.6931472, %v1018_v27  ;;  %v503_v36 = vmul.f32 %v495_v51, %v1289_v48  ;;  %v506_v52 = vadd.f32 66.801315, %v498_v56  ;;  %v507_v43 = vadd.f32 66.801315, %v499_v62 }
  0x83   :  { %v1022_v59 = vpop.eup %1021  ;;  %v589_v46 = vmul.f32 0.6931472, %v1020_v5  ;;  %v504_v26 = vmul.f32 %v496_v20, %v1293_v41  ;;  %v508_v0 = vadd.f32 66.801315, %v500_v2  ;;  %v505_v17 = vmul.f32 %v497_v60, %v1298_v42 }
  0x84   :  { %v1024_v28 = vpop.eup %1023  ;;  %v591_v45 = vmul.f32 0.6931472, %v1022_v59  ;;  %v1444_v23 = vmul.f32 -2.0, %v587_v24  ;;  %v509_v4 = vadd.f32 66.801315, %v501_v40  ;;  %v1453_v20 = vmul.f32 %v1266_v22, %v454_v8 }
  0x85   :  { %v1026_v55 = vpop.eup %1025  ;;  %v593_v35 = vmul.f32 0.6931472, %v1024_v28  ;;  %v1447_v30 = vmul.f32 -2.0, %v589_v46  ;;  %v510_v27 = vadd.f32 66.801315, %v502_v57  ;;  %v514_v28 = vmul.f32 %v506_v52, %v1243_v11 }
  0x86   :  { %v1028_v61 = vpop.eup %1027  ;;  %v595_v51 = vmul.f32 0.6931472, %v1026_v55  ;;  %v1449_v56 = vmul.f32 -2.0, %v591_v45  ;;  %1033 = vrsqrt.f32 %v1444_v23  ;;  %v511_v2 = vadd.f32 66.801315, %v503_v36 }
  0x87   :  { %v1030_v62 = vpop.eup %1029  ;;  %v597_v5 = vmul.f32 0.6931472, %v1028_v61  ;;  %v1455_v24 = vmul.f32 -2.0, %v593_v35  ;;  %v512_v40 = vadd.f32 66.801315, %v504_v26  ;;  %1035 = vrsqrt.f32 %v1447_v30  ;;  %v1858_v35 = vld [vmem:[#allocation10_spill] sm:$0xff] }
  0x88   :  { %v1032_v60 = vpop.eup %1031  ;;  %v599_v59 = vmul.f32 0.6931472, %v1030_v62  ;;  %v1457_v46 = vmul.f32 -2.0, %v595_v51  ;;  %v513_v57 = vadd.f32 66.801315, %v505_v17  ;;  %v515_v22 = vmul.f32 %v507_v43, %v1251_v15 }
  0x89   :  { %v601_v45 = vmul.f32 0.6931472, %v1032_v60  ;;  %v1461_v55 = vmul.f32 -2.0, %v597_v5  ;;  %v516_v8 = vmul.f32 %v508_v0, %v1260_v18  ;;  %1037 = vrsqrt.f32 %v1449_v56 }
  0x8a   :  { %v1465_v36 = vmul.f32 -2.0, %v599_v59  ;;  %v1469_v26 = vmul.f32 %v1270_v25, %v455_v32  ;;  %v1472_v61 = vmul.f32 %v1858_v35, %v456_v39  ;;  %1039 = vrsqrt.f32 %v1455_v24 }
  0x8b   :  { %v1474_v17 = vmul.f32 -2.0, %v601_v45  ;;  %v1478_v52 = vmul.f32 %v509_v4, %v1281_v34  ;;  %v1481_v43 = vmul.f32 %v510_v27, %v1285_v38  ;;  %v1484_v0 = vmul.f32 %v511_v2, %v1289_v48 }
  0x8c   :  { %1857 = vst [vmem:[#allocation22_spill] sm:$0xff] %v1469_v26  ;;  %1859 = vst [vmem:[#allocation10_spill] sm:$0xff] %v1472_v61  ;;  %1041 = vrsqrt.f32 %v1457_v46  ;;  %v1488_v25 = vmul.f32 %v512_v40, %v1293_v41  ;;  %v1491_v32 = vmul.f32 %v513_v57, %v1298_v42  ;;  %v1493_v39 = vadd.f32 -13.280682, %v514_v28 }
  0x8d   :  { %1043 = vrsqrt.f32 %v1461_v55  ;;  %v1496_v4 = vadd.f32 -13.280682, %v515_v22  ;;  %v1498_v51 = vadd.f32 -13.280682, %v516_v8  ;;  %vm612_vm0 = vcmp.eq.f32.partialorder %v1444_v23, inf }
  0x8e   :  { %1045 = vrsqrt.f32 %v1465_v36  ;;  %vm614_vm1 = vcmp.eq.f32.partialorder %v1444_v23, 0.0  ;;  %v615_v27 = vand.u32 2147483648, %v1444_v23  ;;  %vm619_vm2 = vcmp.eq.f32.partialorder %v1447_v30, inf }
  0x8f   :  { %1047 = vrsqrt.f32 %v1474_v17  ;;  %vm621_vm3 = vcmp.eq.f32.partialorder %v1447_v30, 0.0  ;;  %v622_v2 = vand.u32 2147483648, %v1447_v30  ;;  %vm626_vm4 = vcmp.eq.f32.partialorder %v1449_v56, inf }
  0x90   :  { %v1034_v62 = vpop.eup %1033  ;;  %vm628_vm5 = vcmp.eq.f32.partialorder %v1449_v56, 0.0  ;;  %v629_v60 = vand.u32 2147483648, %v1449_v56  ;;  %vm633_vm6 = vcmp.eq.f32.partialorder %v1455_v24, inf  ;;  %vm635_vm7 = vcmp.eq.f32.partialorder %v1455_v24, 0.0 }
  0x91   :  { %v611_v5 = vmul.f32 %v1034_v62, %v1444_v23  ;;  %v1036_v40 = vpop.eup %1035  ;;  %v636_v59 = vand.u32 2147483648, %v1455_v24  ;;  %vm640_vm8 = vcmp.eq.f32.partialorder %v1457_v46, inf  ;;  %vm642_vm9 = vcmp.eq.f32.partialorder %v1457_v46, 0.0 }
  0x92   :  { %v643_v57 = vand.u32 2147483648, %v1457_v46  ;;  %v618_v45 = vmul.f32 %v1036_v40, %v1447_v30  ;;  %vm647_vm10 = vcmp.eq.f32.partialorder %v1461_v55, inf  ;;  %vm649_vm11 = vcmp.eq.f32.partialorder %v1461_v55, 0.0 }
  0x93   :  { %v613_v28 = vsel %vm612_vm0, %v1444_v23, %v611_v5  ;;  %v1038_v22 = vpop.eup %1037  ;;  %v650_v35 = vand.u32 2147483648, %v1461_v55  ;;  %vm654_vm12 = vcmp.eq.f32.partialorder %v1465_v36, inf  ;;  %vm656_vm13 = vcmp.eq.f32.partialorder %v1465_v36, 0.0 }
  0x94   :  { %v1526_v8 = vsel %vm614_vm1, %v615_v27, %v613_v28  ;;  %v1040_v62 = vpop.eup %1039  ;;  %v620_v5 = vsel %vm619_vm2, %v1447_v30, %v618_v45  ;;  %v625_v40 = vmul.f32 %v1038_v22, %v1449_v56  ;;  %v657_v9 = vand.u32 2147483648, %v1465_v36 }
  0x95   :  { %v666_v7 = vmul.f32 -0.007784894, %v1526_v8  ;;  %v1539_v27 = vsel %vm621_vm3, %v622_v2, %v620_v5  ;;  %v632_v28 = vmul.f32 %v1040_v62, %v1455_v24  ;;  %vm661_vm14 = vcmp.eq.f32.partialorder %v1474_v17, inf }
  0x96   :  { %v1042_v23 = vpop.eup %1041  ;;  %vm663_vm15 = vcmp.eq.f32.partialorder %v1474_v17, 0.0  ;;  %v627_v45 = vsel %vm626_vm4, %v1449_v56, %v625_v40  ;;  %v664_v61 = vand.u32 2147483648, %v1474_v17  ;;  %v667_v47 = vmul.f32 -0.007784894, %v1539_v27 }
  0x97   :  { %v1044_v31 = vpop.eup %1043  ;;  %v639_v22 = vmul.f32 %v1042_v23, %v1457_v46  ;;  %v1552_v2 = vsel %vm628_vm5, %v629_v60, %v627_v45  ;;  %v634_v62 = vsel %vm633_vm6, %v1455_v24, %v632_v28  ;;  %v674_v44 = vadd.f32 -0.32239646, %v666_v7 }
  0x98   :  { %v1046_v30 = vpop.eup %1045  ;;  %v646_v5 = vmul.f32 %v1044_v31, %v1461_v55  ;;  %v1560_v40 = vsel %vm635_vm7, %v636_v59, %v634_v62  ;;  %v668_v60 = vmul.f32 -0.007784894, %v1552_v2  ;;  %vm826_vm0 = vcmp.gt.f32.partialorder %v1215_v49, 0.5 }
  0x99   :  { %v1048_v26 = vpop.eup %1047  ;;  %v641_v23 = vsel %vm640_vm8, %v1457_v46, %v639_v22  ;;  %v653_v56 = vmul.f32 %v1046_v30, %v1465_v36  ;;  %v669_v24 = vmul.f32 -0.007784894, %v1560_v40  ;;  %vm827_vm1 = vcmp.gt.f32.partialorder %v1223_v6, 0.5 }
  0x9a   :  { %v1569_v45 = vsel %vm642_vm9, %v643_v57, %v641_v23  ;;  %v648_v31 = vsel %vm647_vm10, %v1461_v55, %v646_v5  ;;  %v660_v7 = vmul.f32 %v1048_v26, %v1474_v17  ;;  %v675_v57 = vadd.f32 -0.32239646, %v667_v47 }
  0x9b   :  { %v1578_v59 = vsel %vm649_vm11, %v650_v35, %v648_v31  ;;  %v655_v28 = vsel %vm654_vm12, %v1465_v36, %v653_v56  ;;  %v670_v46 = vmul.f32 -0.007784894, %v1569_v45  ;;  %v676_v55 = vadd.f32 -0.32239646, %v668_v60 }
  0x9c   :  { %v1586_v22 = vsel %vm656_vm13, %v657_v9, %v655_v28  ;;  %v662_v26 = vsel %vm661_vm14, %v1474_v17, %v660_v7  ;;  %v671_v30 = vmul.f32 -0.007784894, %v1578_v59  ;;  %v677_v5 = vadd.f32 -0.32239646, %v669_v24 }
  0x9d   :  { %v1594_v35 = vsel %vm663_vm15, %v664_v61, %v662_v26  ;;  %v672_v62 = vmul.f32 -0.007784894, %v1586_v22  ;;  %v678_v23 = vadd.f32 -0.32239646, %v670_v46  ;;  %v525_v47 = vadd.f32 -13.280682, %v1478_v52 }
  0x9e   :  { %v673_v9 = vmul.f32 -0.007784894, %v1594_v35  ;;  %v679_v36 = vadd.f32 -0.32239646, %v671_v30  ;;  %v682_v56 = vmul.f32 %v674_v44, %v1526_v8  ;;  %v526_v31 = vadd.f32 -13.280682, %v1481_v43 }
  0x9f   :  { %v530_v60 = vmul.f32 %v1493_v39, %v1243_v11  ;;  %v531_v61 = vmul.f32 %v1496_v4, %v1251_v15  ;;  %v680_v17 = vadd.f32 -0.32239646, %v672_v62  ;;  %v683_v24 = vmul.f32 %v675_v57, %v1539_v27 }
  0xa0   :  { %v681_v7 = vadd.f32 -0.32239646, %v673_v9  ;;  %v684_v28 = vmul.f32 %v676_v55, %v1552_v2  ;;  %v690_v52 = vadd.f32 -2.4007583, %v682_v56  ;;  %v527_v46 = vadd.f32 -13.280682, %v1484_v0 }
  0xa1   :  { %v685_v26 = vmul.f32 %v677_v5, %v1560_v40  ;;  %v686_v44 = vmul.f32 %v678_v23, %v1569_v45  ;;  %v687_v43 = vmul.f32 %v679_v36, %v1578_v59  ;;  %v528_v11 = vadd.f32 -13.280682, %v1488_v25  ;;  %v1860_v25 = vld [vmem:[#allocation11_spill] sm:$0xff] }
  0xa2   :  { %v529_v39 = vadd.f32 -13.280682, %v1491_v32  ;;  %v532_v15 = vmul.f32 %v1498_v51, %v1260_v18  ;;  %v688_v4 = vmul.f32 %v680_v17, %v1586_v22  ;;  %v533_v57 = vmul.f32 %v525_v47, %v1281_v34 }
  0xa3   :  { %v534_v30 = vmul.f32 %v526_v31, %v1285_v38  ;;  %v538_v0 = vadd.f32 1.0, %v530_v60  ;;  %v689_v55 = vmul.f32 %v681_v7, %v1594_v35  ;;  %v539_v62 = vadd.f32 1.0, %v531_v61 }
  0xa4   :  { %v691_v5 = vadd.f32 -2.4007583, %v683_v24  ;;  %v692_v23 = vadd.f32 -2.4007583, %v684_v28  ;;  %v698_v9 = vmul.f32 %v690_v52, %v1526_v8  ;;  %v1622_v32 = vmul.f32 %v1860_v25, %v1436_v58 }
  0xa5   :  { %v693_v36 = vadd.f32 -2.4007583, %v685_v26  ;;  %v694_v18 = vadd.f32 -2.4007583, %v686_v44  ;;  %v695_v51 = vadd.f32 -2.4007583, %v687_v43  ;;  %v535_v56 = vmul.f32 %v527_v46, %v1289_v48 }
  0xa6   :  { %1861 = vst [vmem:[#allocation11_spill] sm:$0xff] %v1622_v32  ;;  %v536_v34 = vmul.f32 %v528_v11, %v1293_v41  ;;  %v540_v38 = vadd.f32 1.0, %v532_v15  ;;  %v696_v47 = vadd.f32 -2.4007583, %v688_v4  ;;  %v537_v31 = vmul.f32 %v529_v39, %v1298_v42 }
  0xa7   :  { %v541_v60 = vadd.f32 1.0, %v533_v57  ;;  %v542_v61 = vadd.f32 1.0, %v534_v30  ;;  %v697_v17 = vadd.f32 -2.4007583, %v689_v55  ;;  %1049 = vrcp.f32 %v538_v0 }
  0xa8   :  { %v699_v7 = vmul.f32 %v691_v5, %v1539_v27  ;;  %v700_v58 = vmul.f32 %v692_v23, %v1552_v2  ;;  %v706_v24 = vadd.f32 -2.5497324, %v698_v9  ;;  %1051 = vrcp.f32 %v539_v62 }
  0xa9   :  { %v701_v28 = vmul.f32 %v693_v36, %v1560_v40  ;;  %v702_v48 = vmul.f32 %v694_v18, %v1569_v45  ;;  %v703_v41 = vmul.f32 %v695_v51, %v1578_v59  ;;  %v543_v52 = vadd.f32 1.0, %v535_v56 }
  0xaa   :  { %v544_v46 = vadd.f32 1.0, %v536_v34  ;;  %1053 = vrcp.f32 %v540_v38  ;;  %v704_v42 = vmul.f32 %v696_v47, %v1586_v22  ;;  %v545_v26 = vadd.f32 1.0, %v537_v31 }
  0xab   :  { %1055 = vrcp.f32 %v541_v60  ;;  %v705_v44 = vmul.f32 %v697_v17, %v1594_v35  ;;  %v746_v43 = vmul.f32 0.007784696, %v1526_v8  ;;  %v707_v11 = vadd.f32 -2.5497324, %v699_v7 }
  0xac   :  { %v708_v39 = vadd.f32 -2.5497324, %v700_v58  ;;  %v714_v15 = vmul.f32 %v706_v24, %v1526_v8  ;;  %v747_v4 = vmul.f32 0.007784696, %v1539_v27  ;;  %1057 = vrcp.f32 %v542_v61 }
  0xad   :  { %v709_v57 = vadd.f32 -2.5497324, %v701_v28  ;;  %v710_v30 = vadd.f32 -2.5497324, %v702_v48  ;;  %v1637_v0 = vadd.f32 -2.5497324, %v703_v41  ;;  %1059 = vrcp.f32 %v543_v52 }
  0xae   :  { %v1639_v55 = vadd.f32 -2.5497324, %v704_v42  ;;  %v748_v62 = vmul.f32 0.007784696, %v1552_v2  ;;  %v749_v5 = vmul.f32 0.007784696, %v1560_v40  ;;  %1061 = vrcp.f32 %v544_v46 }
  0xaf   :  { %v1643_v23 = vadd.f32 -2.5497324, %v705_v44  ;;  %v750_v9 = vmul.f32 0.007784696, %v1569_v45  ;;  %v751_v25 = vmul.f32 0.007784696, %v1578_v59  ;;  %1063 = vrcp.f32 %v545_v26 }
  0xb0   :  { %v1647_v36 = vadd.f32 4.3746643, %v714_v15  ;;  %v752_v18 = vmul.f32 0.007784696, %v1586_v22  ;;  %v753_v51 = vmul.f32 0.007784696, %v1594_v35  ;;  %v1652_v56 = vmul.f32 %v707_v11, %v1539_v27 }
  0xb1   :  { %v754_v34 = vadd.f32 0.32246712, %v746_v43  ;;  %v755_v38 = vadd.f32 0.32246712, %v747_v4  ;;  %v756_v47 = vadd.f32 0.32246712, %v748_v62  ;;  %v1654_v31 = vpop.eup %1049  ;;  %v1657_v60 = vmul.f32 %v708_v39, %v1552_v2 }
  0xb2   :  { %v757_v61 = vadd.f32 0.32246712, %v749_v5  ;;  %v758_v17 = vadd.f32 0.32246712, %v750_v9  ;;  %v759_v7 = vadd.f32 0.32246712, %v751_v25  ;;  %v1659_v58 = vpop.eup %1051  ;;  %v717_v62 = vmul.f32 %v709_v57, %v1560_v40 }
  0xb3   :  { %v760_v24 = vadd.f32 0.32246712, %v752_v18  ;;  %v761_v28 = vadd.f32 0.32246712, %v753_v51  ;;  %v762_v48 = vmul.f32 %v754_v34, %v1526_v8  ;;  %v763_v41 = vmul.f32 %v755_v38, %v1539_v27 }
  0xb4   :  { %v1663_v52 = vpop.eup %1053  ;;  %v764_v46 = vmul.f32 %v756_v47, %v1552_v2  ;;  %v765_v42 = vmul.f32 %v757_v61, %v1560_v40  ;;  %v766_v26 = vmul.f32 %v758_v17, %v1569_v45  ;;  %v767_v44 = vmul.f32 %v759_v7, %v1578_v59 }
  0xb5   :  { %v1669_v43 = vpop.eup %1055  ;;  %v768_v11 = vmul.f32 %v760_v24, %v1586_v22  ;;  %v769_v39 = vmul.f32 %v761_v28, %v1594_v35  ;;  %v770_v15 = vadd.f32 2.4451342, %v762_v48  ;;  %v771_v4 = vadd.f32 2.4451342, %v763_v41 }
  0xb6   :  { %v772_v5 = vadd.f32 2.4451342, %v764_v46  ;;  %v773_v9 = vadd.f32 2.4451342, %v765_v42  ;;  %v774_v25 = vadd.f32 2.4451342, %v766_v26  ;;  %v1674_v18 = vpop.eup %1057 }
  0xb7   :  { %v775_v51 = vadd.f32 2.4451342, %v767_v44  ;;  %v776_v34 = vadd.f32 2.4451342, %v768_v11  ;;  %v777_v38 = vadd.f32 2.4451342, %v769_v39  ;;  %v778_v47 = vmul.f32 %v770_v15, %v1526_v8  ;;  %v1677_v61 = vpop.eup %1059 }
  0xb8   :  { %v779_v17 = vmul.f32 %v771_v4, %v1539_v27  ;;  %v780_v7 = vmul.f32 %v772_v5, %v1552_v2  ;;  %v781_v24 = vmul.f32 %v773_v9, %v1560_v40  ;;  %v782_v57 = vmul.f32 %v774_v25, %v1569_v45  ;;  %v1683_v28 = vpop.eup %1061 }
  0xb9   :  { %v783_v48 = vmul.f32 %v775_v51, %v1578_v59  ;;  %v784_v41 = vmul.f32 %v776_v34, %v1586_v22  ;;  %v785_v46 = vmul.f32 %v777_v38, %v1594_v35  ;;  %v786_v42 = vadd.f32 3.7544086, %v778_v47  ;;  %v1688_v26 = vpop.eup %1063 }
  0xba   :  { %1862 = vst [vmem:[#allocation23_spill] sm:$0xff] %v1688_v26  ;;  %v718_v44 = vmul.f32 %v710_v30, %v1569_v45  ;;  %v787_v11 = vadd.f32 3.7544086, %v779_v17  ;;  %v788_v39 = vadd.f32 3.7544086, %v780_v7  ;;  %vm828_vm2 = vcmp.gt.f32.partialorder %v1225_v53, 0.5 }
  0xbb   :  { %v789_v15 = vadd.f32 3.7544086, %v781_v24  ;;  %v790_v4 = vadd.f32 3.7544086, %v782_v57  ;;  %v791_v5 = vadd.f32 3.7544086, %v783_v48  ;;  %v794_v25 = vmul.f32 %v786_v42, %v1526_v8 }
  0xbc   :  { %v792_v9 = vadd.f32 3.7544086, %v784_v41  ;;  %v793_v32 = vadd.f32 3.7544086, %v785_v46  ;;  %v795_v51 = vmul.f32 %v787_v11, %v1539_v27  ;;  %v796_v34 = vmul.f32 %v788_v39, %v1552_v2 }
  0xbd   :  { %v797_v38 = vmul.f32 %v789_v15, %v1560_v40  ;;  %v798_v47 = vmul.f32 %v790_v4, %v1569_v45  ;;  %v799_v26 = vmul.f32 %v791_v5, %v1578_v59  ;;  %v802_v17 = vadd.f32 1.0, %v794_v25 }
  0xbe   :  { %v800_v30 = vmul.f32 %v792_v9, %v1586_v22  ;;  %v801_v7 = vmul.f32 %v793_v32, %v1594_v35  ;;  %v803_v24 = vadd.f32 1.0, %v795_v51  ;;  %v804_v57 = vadd.f32 1.0, %v796_v34  ;;  %v1863_v34 = vld [vmem:[#allocation22_spill] sm:$0xff] }
  0xbf   :  { %v805_v48 = vadd.f32 1.0, %v797_v38  ;;  %v719_v41 = vmul.f32 %v1637_v0, %v1578_v59  ;;  %v723_v46 = vadd.f32 4.3746643, %v1652_v56  ;;  %v806_v42 = vadd.f32 1.0, %v798_v47 }
  0xc0   :  { %1065 = vrcp.f32 %v802_v17  ;;  %v720_v11 = vmul.f32 %v1639_v55, %v1586_v22  ;;  %v724_v39 = vadd.f32 4.3746643, %v1657_v60  ;;  %v807_v15 = vadd.f32 1.0, %v799_v26 }
  0xc1   :  { %1067 = vrcp.f32 %v803_v24  ;;  %v721_v32 = vmul.f32 %v1643_v23, %v1594_v35  ;;  %v725_v4 = vadd.f32 4.3746643, %v717_v62  ;;  %v808_v5 = vadd.f32 1.0, %v800_v30  ;;  %v1864_v30 = vld [vmem:[#allocation20_spill] sm:$0xff] }
  0xc2   :  { %1069 = vrcp.f32 %v804_v57  ;;  %v726_v9 = vadd.f32 4.3746643, %v718_v44  ;;  %v730_v0 = vmul.f32 %v1647_v36, %v1526_v8  ;;  %v809_v56 = vadd.f32 1.0, %v801_v7 }
  0xc3   :  { %1071 = vrcp.f32 %v805_v48  ;;  %v727_v25 = vadd.f32 4.3746643, %v719_v41  ;;  %v731_v51 = vmul.f32 %v723_v46, %v1539_v27  ;;  %v1713_v55 = vmul.f32 %v1654_v31, %v1421_v37  ;;  %v1865_v48 = vld [vmem:[#allocation21_spill] sm:$0xff] }
  0xc4   :  { %1073 = vrcp.f32 %v806_v42  ;;  %v728_v23 = vadd.f32 4.3746643, %v720_v11  ;;  %v732_v60 = vmul.f32 %v724_v39, %v1552_v2  ;;  %v1719_v8 = vmul.f32 %v1659_v58, %v1428_v33 }
  0xc5   :  { %1075 = vrcp.f32 %v807_v15  ;;  %v729_v36 = vadd.f32 4.3746643, %v721_v32  ;;  %v733_v27 = vmul.f32 %v725_v4, %v1560_v40  ;;  %v734_v62 = vmul.f32 %v726_v9, %v1569_v45  ;;  %v1867_v15 = vld [vmem:[#allocation12_spill] sm:$0xff]  ;;  %v1869_v32 = vld [vmem:[#allocation14_spill] sm:$0xff]  ;;  %v1870_v4 = vld [vmem:[#allocation11_spill] sm:$0xff] }
  0xc6   :  { %1077 = vrcp.f32 %v808_v5  ;;  %v738_v37 = vadd.f32 2.938164, %v730_v0  ;;  %vm829_vm3 = vcmp.gt.f32.partialorder %v1239_v10, 0.5  ;;  %vm850_vm4 = vcmp.lt.f32.partialorder %v1376_v1, 0.02425  ;;  %v1871_v5 = vld [vmem:[#allocation23_spill] sm:$0xff] }
  0xc7   :  { %1079 = vrcp.f32 %v809_v56  ;;  %v1728_v2 = vmul.f32 %v1663_v52, %v1432_v54  ;;  %v735_v33 = vmul.f32 %v727_v25, %v1578_v59  ;;  %v739_v31 = vadd.f32 2.938164, %v731_v51 }
  0xc8   :  { %vm830_vm5 = vcmp.gt.f32.partialorder %v1245_v13, 0.5  ;;  %vm851_vm6 = vcmp.lt.f32.partialorder %v1379_v63, 0.02425  ;;  %v553_v40 = vmul.f32 %v1669_v43, %v1439_v50  ;;  %v736_v45 = vmul.f32 %v728_v23, %v1586_v22  ;;  %v1873_v23 = vld [vmem:[#allocation16_spill] sm:$0xff] }
  0xc9   :  { %v740_v58 = vadd.f32 2.938164, %v732_v60  ;;  %vm831_vm7 = vcmp.gt.f32.partialorder %v1247_v14, 0.5  ;;  %vm852_vm8 = vcmp.lt.f32.partialorder %v1382_v12, 0.02425  ;;  %v737_v54 = vmul.f32 %v729_v36, %v1594_v35  ;;  %v1874_v60 = vld [vmem:[#allocation17_spill] sm:$0xff] }
  0xca   :  { %v1066_v26 = vpop.eup %1065  ;;  %v741_v52 = vadd.f32 2.938164, %v733_v27  ;;  %vm853_vm10 = vcmp.lt.f32.partialorder %v1385_v29, 0.02425  ;;  %v555_v50 = vmul.f32 %v1674_v18, %v1453_v20  ;;  %v742_v22 = vadd.f32 2.938164, %v734_v62 }
  0xcb   :  { %v1068_v59 = vpop.eup %1067  ;;  %v811_v43 = vmul.f32 %v1066_v26, %v738_v37  ;;  %v557_v35 = vmul.f32 %v1677_v61, %v1863_v34  ;;  %v743_v38 = vadd.f32 2.938164, %v735_v33  ;;  %v744_v7 = vadd.f32 2.938164, %v736_v45  ;;  %v1866_v18 = vld [vmem:[#allocation10_spill] sm:$0xff]  ;;  %v1868_v61 = vld [vmem:[#allocation13_spill] sm:$0xff] }
  0xcc   :  { %v1070_v44 = vpop.eup %1069  ;;  %v813_v47 = vmul.f32 %v1068_v59, %v739_v31  ;;  %v559_v41 = vmul.f32 %v1683_v28, %v1866_v18  ;;  %v745_v46 = vadd.f32 2.938164, %v737_v54  ;;  %vm225_vm13 = vcmp.lt.f32.partialorder %v1868_v61, 0.05  ;;  %v1872_v28 = vld [vmem:[#allocation15_spill] sm:$0xff]  ;;  %v1875_v36 = vld [vmem:[#allocation18_spill] sm:$0xff] }
  0xcd   :  { %v1072_v17 = vpop.eup %1071  ;;  %v815_v24 = vmul.f32 %v1070_v44, %v740_v58  ;;  %v834_v57 = vsub.f32 0.0, %v811_v43  ;;  %vm226_vm14 = vcmp.lt.f32.partialorder %v1869_v32, 0.05  ;;  %v561_v9 = vmul.f32 %v1871_v5, %v1870_v4  ;;  %v1876_v31 = vld [vmem:[#allocation19_spill] sm:$0xff]  ;;  %v905_v5 = vld [vmem:[#allocation4 + $0x38] sm:$0xff] }
  0xce   :  { %v1074_v20 = vpop.eup %1073  ;;  %v817_v42 = vmul.f32 %v1072_v17, %v741_v52  ;;  %v835_v11 = vsub.f32 0.0, %v813_v47  ;;  %vm227_vm15 = vcmp.lt.f32.partialorder %v1872_v28, 0.05  ;;  %vm228_vm9 = vcmp.lt.f32.partialorder %v1873_v23, 0.05  ;;  %v898_v17 = vld [vmem:[#allocation4] sm:$0xff] }
  0xcf   :  { %v1076_v39 = vpop.eup %1075  ;;  %v819_v0 = vmul.f32 %v1074_v20, %v742_v22  ;;  %v836_v56 = vsub.f32 0.0, %v815_v24  ;;  %v842_v25 = vsel %vm826_vm0, %v834_v57, %v811_v43  ;;  %vm229_vm11 = vcmp.lt.f32.partialorder %v1874_v60, 0.05  ;;  %v901_v20 = vld [vmem:[#allocation4 + $0x18] sm:$0xff]  ;;  %v903_v18 = vld [vmem:[#allocation4 + $0x28] sm:$0xff] }
  0xd0   :  { %v1078_v51 = vpop.eup %1077  ;;  %vm230_vm12 = vcmp.lt.f32.partialorder %v1875_v36, 0.05  ;;  %v821_v27 = vmul.f32 %v1076_v39, %v743_v38  ;;  %v837_v62 = vsub.f32 0.0, %v817_v42  ;;  %v843_v37 = vsel %vm827_vm1, %v835_v11, %v813_v47  ;;  %v904_v11 = vld [vmem:[#allocation4 + $0x30] sm:$0xff] }
  0xd1   :  { %v858_v33 = vsel %vm850_vm4, %v842_v25, %v1713_v55  ;;  %v1080_v49 = vpop.eup %1079  ;;  %vm231_vm0 = vcmp.lt.f32.partialorder %v1876_v31, 0.05  ;;  %v823_v45 = vmul.f32 %v1078_v51, %v744_v7  ;;  %v838_v58 = vsub.f32 0.0, %v819_v0  ;;  %v899_v7 = vld [vmem:[#allocation4 + $0x8] sm:$0xff] }
  0xd2   :  { %v844_v26 = vsel %vm828_vm2, %v836_v56, %v815_v24  ;;  %v859_v54 = vsel %vm851_vm6, %v843_v37, %v1719_v8  ;;  %v825_v52 = vmul.f32 %v1080_v49, %v745_v46  ;;  %v839_v59 = vsub.f32 0.0, %v821_v27 }
  0xd3   :  { %v845_v6 = vsel %vm829_vm3, %v837_v62, %v817_v42  ;;  %v860_v1 = vsel %vm852_vm8, %v844_v26, %v1728_v2  ;;  %v840_v55 = vsub.f32 0.0, %v823_v45  ;;  %v846_v22 = vsel %vm830_vm5, %v838_v58, %v819_v0 }
  0xd4   :  { %v861_v53 = vsel %vm853_vm10, %v845_v6, %v553_v40  ;;  %v866_v43 = vmul.f32 0.0001, %v858_v33  ;;  %v841_v44 = vsub.f32 0.0, %v825_v52  ;;  %v847_v63 = vsel %vm831_vm7, %v839_v59, %v821_v27 }
  0xd5   :  { %vm1877_vm1 = vcmp.lt.f32.partialorder %v1388_v3, 0.02425  ;;  %v867_v8 = vmul.f32 0.0001, %v859_v54  ;;  %vm1878_vm2 = vcmp.gt.f32.partialorder %v1253_v16, 0.5  ;;  %vm1880_vm4 = vcmp.gt.f32.partialorder %v1263_v21, 0.5 }
  0xd6   :  { %v862_v10 = vsel %vm1877_vm1, %v846_v22, %v555_v50  ;;  %v848_v12 = vsel %vm1878_vm2, %v840_v55, %v823_v45  ;;  %vm1879_vm3 = vcmp.lt.f32.partialorder %v1391_v19, 0.02425  ;;  %v868_v13 = vmul.f32 0.0001, %v860_v1  ;;  %v900_v19 = vld [vmem:[#allocation4 + $0x10] sm:$0xff]  ;;  %v902_v21 = vld [vmem:[#allocation4 + $0x20] sm:$0xff] }
  0xd7   :  { %v863_v2 = vsel %vm1879_vm3, %v847_v63, %v557_v35  ;;  %v869_v34 = vmul.f32 0.0001, %v861_v53  ;;  %v849_v29 = vsel %vm1880_vm4, %v841_v44, %v825_v52  ;;  %vm1881_vm5 = vcmp.lt.f32.partialorder %v1864_v30, 0.02425 }
  0xd8   :  { %v864_v40 = vsel %vm1881_vm5, %v848_v12, %v559_v41  ;;  %v870_v14 = vmul.f32 0.0001, %v862_v10  ;;  %v871_v38 = vmul.f32 0.0001, %v863_v2  ;;  %vm1882_vm6 = vcmp.lt.f32.partialorder %v1865_v48, 0.02425 }
  0xd9   :  { %v865_v3 = vsel %vm1882_vm6, %v849_v29, %v561_v9  ;;  %v872_v50 = vmul.f32 0.0001, %v864_v40  ;;  %v1003_v47 = vclamps-f32 %v866_v43, 0.0002  ;;  %v1004_v16 = vclamps-f32 %v867_v8, 0.0002 }
  0xda   :  { %v873_v35 = vmul.f32 0.0001, %v865_v3  ;;  %v1005_v24 = vclamps-f32 %v868_v13, 0.0002  ;;  %v1006_v57 = vclamps-f32 %v869_v34, 0.0002 }
  0xdb   :  { %v1007_v46 = vclamps-f32 %v870_v14, 0.0002  ;;  %v1008_v30 = vclamps-f32 %v871_v38, 0.0002  ;;  %v1009_v41 = vclamps-f32 %v872_v50, 0.0002 }
  0xdc   :  { %v1010_v42 = vclamps-f32 %v873_v35, 0.0002  ;;  %vm1883_vm7 = vcmp.lt.f32.partialorder %v1867_v15, 0.05  ;;  %v907_v39 = vsel %vm225_vm13, %v1004_v16, 0.0  ;;  %v908_v4 = vsel %vm226_vm14, %v1005_v24, 0.0 }
  0xdd   :  { %v906_v48 = vsel %vm1883_vm7, %v1003_v47, 0.0  ;;  %v909_v9 = vsel %vm227_vm15, %v1006_v57, 0.0  ;;  %v910_v0 = vsel %vm228_vm9, %v1007_v46, 0.0  ;;  %v911_v56 = vsel %vm229_vm11, %v1008_v30, 0.0 }
  0xde   :  { %v912_v15 = vsel %vm230_vm12, %v1009_v41, 0.0  ;;  %v913_v61 = vsel %vm231_vm0, %v1010_v42, 0.0  ;;  %v914_v32 = vadd.f32 %v906_v48, %v898_v17  ;;  %v915_v25 = vadd.f32 %v907_v39, %v899_v7 }
  0xdf   :  { %v916_v51 = vadd.f32 %v908_v4, %v900_v19  ;;  %v917_v27 = vadd.f32 %v909_v9, %v901_v20  ;;  %v918_v28 = vadd.f32 %v910_v0, %v902_v21  ;;  %v919_v62 = vadd.f32 %v911_v56, %v903_v18 }
  0xe0   :  { %v920_v37 = vadd.f32 %v912_v15, %v904_v11  ;;  %v921_v23 = vadd.f32 %v913_v61, %v905_v5  ;;  %922 = vst [vmem:[#allocation7] sm:$0xff] %v914_v32  ;;  %923 = vst [vmem:[#allocation7 + $0x8] sm:$0xff] %v915_v25 }
  0xe1   :  { %924 = vst [vmem:[#allocation7 + $0x10] sm:$0xff] %v916_v51  ;;  %925 = vst [vmem:[#allocation7 + $0x18] sm:$0xff] %v917_v27 }
  0xe2   :  { %926 = vst [vmem:[#allocation7 + $0x20] sm:$0xff] %v918_v28  ;;  %927 = vst [vmem:[#allocation7 + $0x28] sm:$0xff] %v919_v62 }
  0xe3   :  { %928 = vst [vmem:[#allocation7 + $0x30] sm:$0xff] %v920_v37  ;;  %929 = vst [vmem:[#allocation7 + $0x38] sm:$0xff] %v921_v23 }
  0xe4   :  { %1114 = shalt.err (!%p1111_p12)
}
  0xe5   :  { %s1115_s4 = scalar_lea.hbm %s1830_s2, 1024 }
  0xe6   :  { %p1116_p13 = scmp.ne.s32.totalorder %s1830_s2, %s1115_s4  ;;  %p1119_p0 = scmp.lt.u32.totalorder %s1115_s4, %s1830_s2 }
  0xe8   :  { %p1121_p1 = pnand %p1119_p0, %p1116_p13 }
  0xea   :  { %1124 = shalt.err (!%p1121_p1)
}
  0xeb   :  { %941 = dma.vmem_to_hbm [thread:$0]  %s936_s28, 1024, %s1830_s2, [#allocation6], %s1130_s19, %s1130_s19, %s1131_s20  }
  0xec   :  { %1127 = dma.done.wait [#allocation6], 1024  }
  0xed   :  { %1128 = vsyncadd [#allocation6], 4294966272 }
  0xee   :  { %945 = vsyncpa [#allocation5], 1 }
  0xef   :  { %946 = vsyncpa [#allocation6], 1 }

</bundles_post_ra>
